<compile_context>
chip_gen: v7x
topology: tpu7x:2x2x1
jax: 0.10.0
libtpu: 0.0.40
codegen_flags: <defaults>
</compile_context>

<pallas_src>
import functools

import jax
import jax.numpy as jnp
from jax.experimental import pallas as pl
from jax.experimental.pallas import tpu as pltpu


def _cdiv(a, b):
    return (a + b - 1) // b


def _round_up(x, m):
    return _cdiv(x, m) * m


def _vmem_bytes(tb, n, cin, cout_pad, chunk, in_bytes):
    x_blk = 2 * tb * n * cin * in_bytes                    # double-buffered input block
    w_blk = 2 * (chunk * cin) * (chunk * cout_pad) * 2     # resident bf16 block-diag weight
    s_blk = 2 * cout_pad * 4                               # shift
    o_blk = 2 * tb * cout_pad * 4                          # double-buffered output block
    zc = tb * chunk * cout_pad * 4                         # per-chunk matmul result (f32)
    xc = tb * chunk * cin * 2                              # per-chunk bf16 cast of x
    return x_blk + w_blk + s_blk + o_blk + zc + xc


def _choose_tb(batch, tb_max, n, cin, cout_pad, chunk, in_bytes, budget):
    if batch <= 8:
        return batch                                       # block == full dim (always legal)
    # Keep at least 2 grid steps so both v7x TensorCores get work.
    tb = min(tb_max, max(8, _round_up(_cdiv(batch, 2), 8)))
    tb = min(tb, max(8, (batch // 8) * 8))
    # Shrink until blocks + intermediates fit the per-generation VMEM budget.
    while tb > 8 and _vmem_bytes(tb, n, cin, cout_pad, chunk, in_bytes) > budget:
        tb = max(8, _round_up(tb // 2, 8))
    return tb


def _pfn_kernel(x_ref, w_ref, shift_ref, out_ref, *, n_points, cin, cout_pad, chunk):
    """One block of TB pillars.

    x_ref:     (TB, N*Cin)                   input dtype (per-chunk bf16 cast in-kernel)
    w_ref:     (chunk*Cin, chunk*COUT_PAD)   bf16 block-diagonal BN-scale-folded weight
    shift_ref: (1, COUT_PAD)                 f32 folded BN shift (beta - mean*scale)
    out_ref:   (TB, COUT_PAD)                f32 per-pillar max, shift+ReLU at the end
    """
    start = 0
    first = True
    while start < n_points:
        ch = min(chunk, n_points - start)
        # (TB, ch*Cin): `ch` points packed per MXU LHS row (natural layout, no reshape).
        xc = x_ref[:, start * cin:(start + ch) * cin].astype(jnp.bfloat16)
        wc = w_ref[:ch * cin, :ch * cout_pad]              # block-diag slice for tail chunk
        zc = jnp.dot(xc, wc, preferred_element_type=jnp.float32)   # (TB, ch*COUT_PAD), f32 acc
        # Collapse the ch per-point groups with lane-aligned elementwise maxes (VPU).
        m = zc[:, :cout_pad]
        for g in range(1, ch):
            m = jnp.maximum(m, zc[:, g * cout_pad:(g + 1) * cout_pad])
        if first:
            out_ref[...] = m
            first = False
        else:
            out_ref[...] = jnp.maximum(out_ref[...], m)
        start += ch
    # Shift + ReLU after the max: exact because the (possibly negative) BN scale is
    # already folded into the weight and +shift / relu are monotone.
    out_ref[...] = jnp.maximum(out_ref[...] + shift_ref[...], 0.0)


def pfn_layer(inputs, weight_t, bn_scale, bn_shift, *, tb_max=1024):
    """inputs: (B, N, Cin); weight_t: (Cin, Cout); bn_*: (Cout,). Returns (B, 1, Cout) f32."""
    B, N, Cin = inputs.shape
    Cout = weight_t.shape[1]
    COUT_PAD = _round_up(Cout, 128)
    in_bytes = jnp.dtype(inputs.dtype).itemsize

    # Points packed per MXU LHS row: k*Cin <= 128 lanes (and k <= 16, k <= N).
    chunk = int(max(1, min(16, min(N, 128 // max(1, Cin)))))

    # Fold BN scale into the weight (before the max) and build the per-chunk
    # block-diagonal weight; pad Cout to 128 for lane-dense output stores.
    w_scaled = weight_t.astype(jnp.float32) * bn_scale.astype(jnp.float32)[None, :]
    w_blkdiag = jnp.zeros((chunk * Cin, chunk * COUT_PAD), jnp.float32)
    for g in range(chunk):
        w_blkdiag = w_blkdiag.at[g * Cin:(g + 1) * Cin,
                                 g * COUT_PAD:g * COUT_PAD + Cout].set(w_scaled)
    w_blkdiag = w_blkdiag.astype(jnp.bfloat16)

    shift = jnp.zeros((1, COUT_PAD), jnp.float32).at[0, :Cout].set(
        bn_shift.astype(jnp.float32))

    # Metadata-only merge of point/feature dims -> lane-dense HBM rows.
    x2d = inputs.reshape(B, N * Cin)

    budget = 32 * 1024 * 1024
    TB = _choose_tb(B, tb_max, N, Cin, COUT_PAD, chunk, in_bytes, budget)
    grid = (_cdiv(B, TB),)
    vmem_est = _vmem_bytes(TB, N, Cin, COUT_PAD, chunk, in_bytes)
    vmem_limit = int(min(56 * 1024 * 1024, max(32 * 1024 * 1024, 2 * vmem_est)))

    kernel = functools.partial(_pfn_kernel, n_points=N, cin=Cin,
                               cout_pad=COUT_PAD, chunk=chunk)

    out2d = pl.pallas_call(
        kernel,
        out_shape=jax.ShapeDtypeStruct((B, COUT_PAD), jnp.float32),
        grid_spec=pltpu.PrefetchScalarGridSpec(
            num_scalar_prefetch=0,
            grid=grid,
            in_specs=[
                pl.BlockSpec((TB, N * Cin), lambda b: (b, 0)),
                pl.BlockSpec((chunk * Cin, chunk * COUT_PAD), lambda b: (0, 0)),  # resident
                pl.BlockSpec((1, COUT_PAD), lambda b: (0, 0)),                    # resident
            ],
            out_specs=pl.BlockSpec((TB, COUT_PAD), lambda b: (b, 0)),
        ),
        compiler_params=pltpu.CompilerParams(
            dimension_semantics=("parallel",),
            vmem_limit_bytes=vmem_limit,
        ),
    )(x2d, w_blkdiag, shift)

    return out2d[:, :Cout].reshape(B, 1, Cout)


def pfn_reference(inputs, weight_t, bn_scale, bn_shift):
    y = jnp.einsum("bnc,cd->bnd", inputs.astype(jnp.float32),
                   weight_t.astype(jnp.float32))
    y = y * bn_scale[None, None, :] + bn_shift[None, None, :]
    y = jnp.maximum(y, 0.0)
    return jnp.max(y, axis=1, keepdims=True)


if __name__ == "__main__":
    key = jax.random.PRNGKey(0)
    k_x, k_w, k_g, k_b, k_m, k_v = jax.random.split(key, 6)

    B, N, Cin, Cout = 16, 32, 16, 32   # small synthetic shapes
    eps = 0.001

    inputs = jax.random.normal(k_x, (B, N, Cin), dtype=jnp.float32)

    # nn.Linear(in_channels, out_channels, bias=False): weight shape (Cout, Cin)
    w_torch_layout = jax.random.normal(k_w, (Cout, Cin), dtype=jnp.float32) * 0.1
    weight_t = w_torch_layout.T                              # (Cin, Cout)

    # BatchNorm1d(Cout) params + running stats (deterministic synthetic values)
    gamma = 1.0 + 0.1 * jax.random.normal(k_g, (Cout,), dtype=jnp.float32)
    beta = 0.1 * jax.random.normal(k_b, (Cout,), dtype=jnp.float32)
    running_mean = 0.1 * jax.random.normal(k_m, (Cout,), dtype=jnp.float32)
    running_var = 1.0 + 0.1 * jax.random.uniform(k_v, (Cout,), dtype=jnp.float32)

    bn_scale = gamma / jnp.sqrt(running_var + eps)
    bn_shift = beta - running_mean * bn_scale

    out = jax.block_until_ready(pfn_layer(inputs, weight_t, bn_scale, bn_shift))
    ref = pfn_reference(inputs, weight_t, bn_scale, bn_shift)

    assert out.shape == (B, 1, Cout), out.shape
    # bf16 activations/weights on the matmul path -> relaxed tolerance vs f32 ref.
    assert jnp.allclose(out, ref, atol=2e-2, rtol=2e-2), (
        float(jnp.max(jnp.abs(out - ref)))
    )
    print("KERNEL_OK")
</pallas_src>

<mosaic_0001>
module attributes {stable_mosaic.version = 11 : i64} {
  func.func @_pfn_kernel(%arg0: i32, %arg1: memref<8x512xf32, #tpu.memory_space<vmem>>, %arg2: memref<128x1024xbf16, #tpu.memory_space<vmem>>, %arg3: memref<1x128xf32, #tpu.memory_space<vmem>>, %arg4: memref<8x128xf32, #tpu.memory_space<vmem>>) attributes {dimension_semantics = [#tpu.dimension_semantics<parallel>], iteration_bounds = array<i64: 2>, scalar_prefetch = 0 : i64, scratch_operands = 0 : i64, tpu.core_type = #tpu.core_type<tc>, window_params = [{transform_indices = @transform_0, window_bounds = array<i64: 8, 512>}, {pipeline_mode = #tpu.pipeline_mode<synchronous>, transform_indices = @transform_1, window_bounds = array<i64: 128, 1024>}, {pipeline_mode = #tpu.pipeline_mode<synchronous>, transform_indices = @transform_2, window_bounds = array<i64: 1, 128>}, {transform_indices = @transform_3, window_bounds = array<i64: 8, 128>}]} {
    %c0 = arith.constant 0 : index
    %c0_0 = arith.constant 0 : index
    %0 = vector.load %arg1[%c0, %c0_0] : memref<8x512xf32, #tpu.memory_space<vmem>>, vector<8x128xf32>
    %1 = arith.truncf %0 : vector<8x128xf32> to vector<8x128xbf16>
    %c0_1 = arith.constant 0 : index
    %c0_2 = arith.constant 0 : index
    %2 = vector.load %arg2[%c0_1, %c0_2] : memref<128x1024xbf16, #tpu.memory_space<vmem>>, vector<128x1024xbf16>
    %cst = arith.constant dense<0.000000e+00> : vector<8x1024xf32>
    %3 = tpu.matmul %1, %2, %cst {dimension_numbers = #tpu.dot_dimension_numbers<[1], [0], [0], [1], [0, 0, 1, 1], [], []>} : vector<8x128xbf16>, vector<128x1024xbf16>, vector<8x1024xf32> -> vector<8x1024xf32>
    %4 = vector.extract_strided_slice %3 {offsets = [0, 0], sizes = [8, 128], strides = [1, 1]} : vector<8x1024xf32> to vector<8x128xf32>
    %5 = vector.extract_strided_slice %3 {offsets = [0, 128], sizes = [8, 128], strides = [1, 1]} : vector<8x1024xf32> to vector<8x128xf32>
    %6 = arith.maximumf %4, %5 : vector<8x128xf32>
    %7 = vector.extract_strided_slice %3 {offsets = [0, 256], sizes = [8, 128], strides = [1, 1]} : vector<8x1024xf32> to vector<8x128xf32>
    %8 = arith.maximumf %6, %7 : vector<8x128xf32>
    %9 = vector.extract_strided_slice %3 {offsets = [0, 384], sizes = [8, 128], strides = [1, 1]} : vector<8x1024xf32> to vector<8x128xf32>
    %10 = arith.maximumf %8, %9 : vector<8x128xf32>
    %11 = vector.extract_strided_slice %3 {offsets = [0, 512], sizes = [8, 128], strides = [1, 1]} : vector<8x1024xf32> to vector<8x128xf32>
    %12 = arith.maximumf %10, %11 : vector<8x128xf32>
    %13 = vector.extract_strided_slice %3 {offsets = [0, 640], sizes = [8, 128], strides = [1, 1]} : vector<8x1024xf32> to vector<8x128xf32>
    %14 = arith.maximumf %12, %13 : vector<8x128xf32>
    %15 = vector.extract_strided_slice %3 {offsets = [0, 768], sizes = [8, 128], strides = [1, 1]} : vector<8x1024xf32> to vector<8x128xf32>
    %16 = arith.maximumf %14, %15 : vector<8x128xf32>
    %17 = vector.extract_strided_slice %3 {offsets = [0, 896], sizes = [8, 128], strides = [1, 1]} : vector<8x1024xf32> to vector<8x128xf32>
    %18 = arith.maximumf %16, %17 : vector<8x128xf32>
    %c0_3 = arith.constant 0 : index
    %c0_4 = arith.constant 0 : index
    %19 = vector.load %arg4[%c0_3, %c0_4] : memref<8x128xf32, #tpu.memory_space<vmem>>, vector<8x128xf32>
    tpu.vector_store %arg4[%c0_3, %c0_4], %18 {strides = array<i32>} : memref<8x128xf32, #tpu.memory_space<vmem>>, vector<8x128xf32>,
    %c0_5 = arith.constant 0 : index
    %c128 = arith.constant 128 : index
    %20 = vector.load %arg1[%c0_5, %c128] : memref<8x512xf32, #tpu.memory_space<vmem>>, vector<8x128xf32>
    %21 = arith.truncf %20 : vector<8x128xf32> to vector<8x128xbf16>
    %c0_6 = arith.constant 0 : index
    %c0_7 = arith.constant 0 : index
    %22 = vector.load %arg2[%c0_6, %c0_7] : memref<128x1024xbf16, #tpu.memory_space<vmem>>, vector<128x1024xbf16>
    %cst_8 = arith.constant dense<0.000000e+00> : vector<8x1024xf32>
    %23 = tpu.matmul %21, %22, %cst_8 {dimension_numbers = #tpu.dot_dimension_numbers<[1], [0], [0], [1], [0, 0, 1, 1], [], []>} : vector<8x128xbf16>, vector<128x1024xbf16>, vector<8x1024xf32> -> vector<8x1024xf32>
    %24 = vector.extract_strided_slice %23 {offsets = [0, 0], sizes = [8, 128], strides = [1, 1]} : vector<8x1024xf32> to vector<8x128xf32>
    %25 = vector.extract_strided_slice %23 {offsets = [0, 128], sizes = [8, 128], strides = [1, 1]} : vector<8x1024xf32> to vector<8x128xf32>
    %26 = arith.maximumf %24, %25 : vector<8x128xf32>
    %27 = vector.extract_strided_slice %23 {offsets = [0, 256], sizes = [8, 128], strides = [1, 1]} : vector<8x1024xf32> to vector<8x128xf32>
    %28 = arith.maximumf %26, %27 : vector<8x128xf32>
    %29 = vector.extract_strided_slice %23 {offsets = [0, 384], sizes = [8, 128], strides = [1, 1]} : vector<8x1024xf32> to vector<8x128xf32>
    %30 = arith.maximumf %28, %29 : vector<8x128xf32>
    %31 = vector.extract_strided_slice %23 {offsets = [0, 512], sizes = [8, 128], strides = [1, 1]} : vector<8x1024xf32> to vector<8x128xf32>
    %32 = arith.maximumf %30, %31 : vector<8x128xf32>
    %33 = vector.extract_strided_slice %23 {offsets = [0, 640], sizes = [8, 128], strides = [1, 1]} : vector<8x1024xf32> to vector<8x128xf32>
    %34 = arith.maximumf %32, %33 : vector<8x128xf32>
    %35 = vector.extract_strided_slice %23 {offsets = [0, 768], sizes = [8, 128], strides = [1, 1]} : vector<8x1024xf32> to vector<8x128xf32>
    %36 = arith.maximumf %34, %35 : vector<8x128xf32>
    %37 = vector.extract_strided_slice %23 {offsets = [0, 896], sizes = [8, 128], strides = [1, 1]} : vector<8x1024xf32> to vector<8x128xf32>
    %38 = arith.maximumf %36, %37 : vector<8x128xf32>
    %c0_9 = arith.constant 0 : index
    %c0_10 = arith.constant 0 : index
    %39 = vector.load %arg4[%c0_9, %c0_10] : memref<8x128xf32, #tpu.memory_space<vmem>>, vector<8x128xf32>
    %40 = arith.maximumf %39, %38 : vector<8x128xf32>
    %c0_11 = arith.constant 0 : index
    %c0_12 = arith.constant 0 : index
    %41 = vector.load %arg4[%c0_11, %c0_12] : memref<8x128xf32, #tpu.memory_space<vmem>>, vector<8x128xf32>
    tpu.vector_store %arg4[%c0_11, %c0_12], %40 {strides = array<i32>} : memref<8x128xf32, #tpu.memory_space<vmem>>, vector<8x128xf32>,
    %c0_13 = arith.constant 0 : index
    %c256 = arith.constant 256 : index
    %42 = vector.load %arg1[%c0_13, %c256] : memref<8x512xf32, #tpu.memory_space<vmem>>, vector<8x128xf32>
    %43 = arith.truncf %42 : vector<8x128xf32> to vector<8x128xbf16>
    %c0_14 = arith.constant 0 : index
    %c0_15 = arith.constant 0 : index
    %44 = vector.load %arg2[%c0_14, %c0_15] : memref<128x1024xbf16, #tpu.memory_space<vmem>>, vector<128x1024xbf16>
    %cst_16 = arith.constant dense<0.000000e+00> : vector<8x1024xf32>
    %45 = tpu.matmul %43, %44, %cst_16 {dimension_numbers = #tpu.dot_dimension_numbers<[1], [0], [0], [1], [0, 0, 1, 1], [], []>} : vector<8x128xbf16>, vector<128x1024xbf16>, vector<8x1024xf32> -> vector<8x1024xf32>
    %46 = vector.extract_strided_slice %45 {offsets = [0, 0], sizes = [8, 128], strides = [1, 1]} : vector<8x1024xf32> to vector<8x128xf32>
    %47 = vector.extract_strided_slice %45 {offsets = [0, 128], sizes = [8, 128], strides = [1, 1]} : vector<8x1024xf32> to vector<8x128xf32>
    %48 = arith.maximumf %46, %47 : vector<8x128xf32>
    %49 = vector.extract_strided_slice %45 {offsets = [0, 256], sizes = [8, 128], strides = [1, 1]} : vector<8x1024xf32> to vector<8x128xf32>
    %50 = arith.maximumf %48, %49 : vector<8x128xf32>
    %51 = vector.extract_strided_slice %45 {offsets = [0, 384], sizes = [8, 128], strides = [1, 1]} : vector<8x1024xf32> to vector<8x128xf32>
    %52 = arith.maximumf %50, %51 : vector<8x128xf32>
    %53 = vector.extract_strided_slice %45 {offsets = [0, 512], sizes = [8, 128], strides = [1, 1]} : vector<8x1024xf32> to vector<8x128xf32>
    %54 = arith.maximumf %52, %53 : vector<8x128xf32>
    %55 = vector.extract_strided_slice %45 {offsets = [0, 640], sizes = [8, 128], strides = [1, 1]} : vector<8x1024xf32> to vector<8x128xf32>
    %56 = arith.maximumf %54, %55 : vector<8x128xf32>
    %57 = vector.extract_strided_slice %45 {offsets = [0, 768], sizes = [8, 128], strides = [1, 1]} : vector<8x1024xf32> to vector<8x128xf32>
    %58 = arith.maximumf %56, %57 : vector<8x128xf32>
    %59 = vector.extract_strided_slice %45 {offsets = [0, 896], sizes = [8, 128], strides = [1, 1]} : vector<8x1024xf32> to vector<8x128xf32>
    %60 = arith.maximumf %58, %59 : vector<8x128xf32>
    %c0_17 = arith.constant 0 : index
    %c0_18 = arith.constant 0 : index
    %61 = vector.load %arg4[%c0_17, %c0_18] : memref<8x128xf32, #tpu.memory_space<vmem>>, vector<8x128xf32>
    %62 = arith.maximumf %61, %60 : vector<8x128xf32>
    %c0_19 = arith.constant 0 : index
    %c0_20 = arith.constant 0 : index
    %63 = vector.load %arg4[%c0_19, %c0_20] : memref<8x128xf32, #tpu.memory_space<vmem>>, vector<8x128xf32>
    tpu.vector_store %arg4[%c0_19, %c0_20], %62 {strides = array<i32>} : memref<8x128xf32, #tpu.memory_space<vmem>>, vector<8x128xf32>,
    %c0_21 = arith.constant 0 : index
    %c384 = arith.constant 384 : index
    %64 = vector.load %arg1[%c0_21, %c384] : memref<8x512xf32, #tpu.memory_space<vmem>>, vector<8x128xf32>
    %65 = arith.truncf %64 : vector<8x128xf32> to vector<8x128xbf16>
    %c0_22 = arith.constant 0 : index
    %c0_23 = arith.constant 0 : index
    %66 = vector.load %arg2[%c0_22, %c0_23] : memref<128x1024xbf16, #tpu.memory_space<vmem>>, vector<128x1024xbf16>
    %cst_24 = arith.constant dense<0.000000e+00> : vector<8x1024xf32>
    %67 = tpu.matmul %65, %66, %cst_24 {dimension_numbers = #tpu.dot_dimension_numbers<[1], [0], [0], [1], [0, 0, 1, 1], [], []>} : vector<8x128xbf16>, vector<128x1024xbf16>, vector<8x1024xf32> -> vector<8x1024xf32>
    %68 = vector.extract_strided_slice %67 {offsets = [0, 0], sizes = [8, 128], strides = [1, 1]} : vector<8x1024xf32> to vector<8x128xf32>
    %69 = vector.extract_strided_slice %67 {offsets = [0, 128], sizes = [8, 128], strides = [1, 1]} : vector<8x1024xf32> to vector<8x128xf32>
    %70 = arith.maximumf %68, %69 : vector<8x128xf32>
    %71 = vector.extract_strided_slice %67 {offsets = [0, 256], sizes = [8, 128], strides = [1, 1]} : vector<8x1024xf32> to vector<8x128xf32>
    %72 = arith.maximumf %70, %71 : vector<8x128xf32>
    %73 = vector.extract_strided_slice %67 {offsets = [0, 384], sizes = [8, 128], strides = [1, 1]} : vector<8x1024xf32> to vector<8x128xf32>
    %74 = arith.maximumf %72, %73 : vector<8x128xf32>
    %75 = vector.extract_strided_slice %67 {offsets = [0, 512], sizes = [8, 128], strides = [1, 1]} : vector<8x1024xf32> to vector<8x128xf32>
    %76 = arith.maximumf %74, %75 : vector<8x128xf32>
    %77 = vector.extract_strided_slice %67 {offsets = [0, 640], sizes = [8, 128], strides = [1, 1]} : vector<8x1024xf32> to vector<8x128xf32>
    %78 = arith.maximumf %76, %77 : vector<8x128xf32>
    %79 = vector.extract_strided_slice %67 {offsets = [0, 768], sizes = [8, 128], strides = [1, 1]} : vector<8x1024xf32> to vector<8x128xf32>
    %80 = arith.maximumf %78, %79 : vector<8x128xf32>
    %81 = vector.extract_strided_slice %67 {offsets = [0, 896], sizes = [8, 128], strides = [1, 1]} : vector<8x1024xf32> to vector<8x128xf32>
    %82 = arith.maximumf %80, %81 : vector<8x128xf32>
    %c0_25 = arith.constant 0 : index
    %c0_26 = arith.constant 0 : index
    %83 = vector.load %arg4[%c0_25, %c0_26] : memref<8x128xf32, #tpu.memory_space<vmem>>, vector<8x128xf32>
    %84 = arith.maximumf %83, %82 : vector<8x128xf32>
    %c0_27 = arith.constant 0 : index
    %c0_28 = arith.constant 0 : index
    %85 = vector.load %arg4[%c0_27, %c0_28] : memref<8x128xf32, #tpu.memory_space<vmem>>, vector<8x128xf32>
    tpu.vector_store %arg4[%c0_27, %c0_28], %84 {strides = array<i32>} : memref<8x128xf32, #tpu.memory_space<vmem>>, vector<8x128xf32>,
    %c0_29 = arith.constant 0 : index
    %c0_30 = arith.constant 0 : index
    %86 = vector.load %arg4[%c0_29, %c0_30] : memref<8x128xf32, #tpu.memory_space<vmem>>, vector<8x128xf32>
    %c0_31 = arith.constant 0 : index
    %c0_32 = arith.constant 0 : index
    %87 = vector.load %arg3[%c0_31, %c0_32] : memref<1x128xf32, #tpu.memory_space<vmem>>, vector<1x128xf32>
    %88 = vector.broadcast %87 : vector<1x128xf32> to vector<8x128xf32>
    %89 = arith.addf %86, %88 : vector<8x128xf32>
    %cst_33 = arith.constant 0.000000e+00 : f32
    %90 = vector.broadcast %cst_33 : f32 to vector<8x128xf32>
    %91 = arith.maximumf %89, %90 : vector<8x128xf32>
    %c0_34 = arith.constant 0 : index
    %c0_35 = arith.constant 0 : index
    %92 = vector.load %arg4[%c0_34, %c0_35] : memref<8x128xf32, #tpu.memory_space<vmem>>, vector<8x128xf32>
    tpu.vector_store %arg4[%c0_34, %c0_35], %91 {strides = array<i32>} : memref<8x128xf32, #tpu.memory_space<vmem>>, vector<8x128xf32>,
    return
  }
  func.func @transform_0(%arg0: i32) -> (i32, i32) {
    %c0_i32 = arith.constant 0 : i32
    %c0_i32_0 = arith.constant 0 : i32
    return %arg0, %c0_i32 : i32, i32
  }
  func.func @transform_1(%arg0: i32) -> (i32, i32) {
    %c0_i32 = arith.constant 0 : i32
    %c0_i32_0 = arith.constant 0 : i32
    %c0_i32_1 = arith.constant 0 : i32
    return %c0_i32, %c0_i32_0 : i32, i32
  }
  func.func @transform_2(%arg0: i32) -> (i32, i32) {
    %c0_i32 = arith.constant 0 : i32
    %c0_i32_0 = arith.constant 0 : i32
    %c0_i32_1 = arith.constant 0 : i32
    return %c0_i32, %c0_i32_0 : i32, i32
  }
  func.func @transform_3(%arg0: i32) -> (i32, i32) {
    %c0_i32 = arith.constant 0 : i32
    %c0_i32_0 = arith.constant 0 : i32
    return %arg0, %c0_i32 : i32, i32
  }
}

</mosaic_0001>

<bundles_post_ra>
// kernel: tpu_custom_call.1
= control target key start
LH: loop header
LB: loop body
LE: loop exit
PB: predicated region body
PF: predicated region fallthrough
CT: control target
= control target key end

     0   :  { %8 = vsyncpa [#allocation3], 0  ;;  %s3589_s0 = inlined_call_operand.hbm [shape: f32[16,512], index: 0, kind: input, shape index: {}]   ;;  %s3590_s1 = inlined_call_operand.hbm [shape: bf16[128,1024], index: 1, kind: input, shape index: {}]   ;;  %s3591_s2 = inlined_call_operand.vmem [shape: f32[1,128], index: 2, kind: input, shape index: {}]   ;;  %s3592_s3 = inlined_call_operand.hbm [shape: f32[16,128], index: 3, kind: output, shape index: {}]  }
   0x1   :  { %10 = vsyncpa [#allocation3 + $0x1], 0 }
   0x2   :  { %11 = vsyncpa [#allocation6], 0 }
   0x3   :  { %12 = vsyncpa [#allocation4], 0 }
   0x4   :  { %14 = vsyncpa [#allocation4 + $0x1], 0  ;;  %s3035_s12 = smov 0   ;;  %s3037_s13 = smov 0  }
   0x5   :  { %s3039_s14 = smov 0   ;;  %s3041_s15 = smov 0  }
   0x6 LB: > { %s3056_s16 = sadd.s32 4294967295, %s3007_s15   ;;  %s2546_s17 = sadd.s32 4294967294, %s3007_s15   ;;  %s3007_s15 = sphi %s3041_s15, %s3653_s15   ;;  %s3003_s14 = sphi %s3039_s14, %s3652_s14   ;;  %s2999_s13 = sphi %s3037_s13, %s3651_s13   ;;  %s2995_s12 = sphi %s3035_s12, %s3650_s12  }
   0x7   : > { %p40_p0 = scmp.ne.s32.totalorder %s2999_s13, %s2995_s12  ;;  %p3593_p1 = scmp.eq.s32.totalorder %s3056_s16, 0 }
   0x8   : > { %p112_p3 = scmp.eq.s32.totalorder %s2546_s17, 1  ;;  %p2547_p5 = scmp.ge.s32.totalorder %s3007_s15, 1 }
   0x9   : > { %p3065_p4 = por %p3593_p1, %p40_p0  ;;  %p119_p7 = scmp.lt.s32.totalorder %s3007_s15, 3 }
   0xa   : > { %p3070_p6 = por %p112_p3, %p40_p0  ;;  %s3009_s21 = smov [#allocation5]  }
   0xb   : > { %s3616_s18 = scalar_select %p3065_p4, 1, 0 }
   0xc   : > { %s3617_s19 = scalar_select %p3070_p6, 1, 0 }
   0xd   : > { %p3075_p8 = pnand %p2547_p5, %p119_p7  ;;  %s131_s22 = sshll.u32 %s3009_s21, 4  ;;  %s3079_s22 = int_to_ptr.vmem [resolvable:$true] %s131_s22 }
   0xe   : > { %s3091_s24 = sadd.s32 1, %s3007_s15   ;;  %s27_s25 = sadd.s32 1, %s3003_s14 }
   0xf   : > { %s3618_s20 = scalar_select %p3075_p8, 1, 0 }
  0x10   : > { %p2827_p9 = pneg %p3075_p8  ;;  %s24_s26 = ssub.s32 %s3007_s15, %s3091_s24 }
  0x11   : > { %s2879_s29 = scalar_lea.hbm %s3590_s1, 8192 }
  0x12   : > { %p3086_p11 = pnand %p2827_p9, %p3593_p1  ;;  %p2880_p12 = scmp.ne.s32.totalorder %s3590_s1, %s2879_s29 }
  0x13   : > { %p2886_p5 = scmp.lt.u32.totalorder %s2879_s29, %s3590_s1 }
  0x14   : > { %p2881_p13 = pneg %p3086_p11 }
  0x16   : > { %p2882_p0 = pnand %p2881_p13, %p2880_p12 }
  0x18   : > { %p2883_p3 = pneg %p2882_p0 }
  0x1a   : > { %p2888_p7 = pnand %p2886_p5, %p2883_p3 }
  0x1c   : > { %2891 = shalt.err (!%p2888_p7)
}
  0x1d   : > { %s2892_s7 = scalar_lea.vmem %s3079_s22, 8192  ;;  %p2900_p2 = scmp.lt.s32.totalorder %s3079_s22, %s3079_s22 }
  0x1e   : > { %p2893_p9 = scmp.ne.s32.totalorder %s3079_s22, %s2892_s7  ;;  %p2901_p6 = scmp.lt.s32.totalorder %s2892_s7, %s2892_s7 }
  0x20   : > { %p2895_p10 = pnand %p2893_p9, %p2881_p13  ;;  %p2902_p4 = por %p2901_p6, %p2900_p2 }
  0x22   : > { %p2896_p1 = pneg %p2895_p10 }
  0x24   : > { %p2903_p8 = pnand %p2902_p4, %p2896_p1 }
  0x26   : > { %2906 = shalt.err (!%p2903_p8)
}
  0x27   : > { %s3010_s8 = smov 512   ;;  %s3011_s9 = smov 32  }
  0x28   : > { %2830 = dma.hbm_to_vmem [thread:$0]  (!%p3086_p11), %s3590_s1, 8192, %s3079_s22, [#allocation6], %s3010_s8, %s3010_s8, %s3011_s9  }
  0x29   : > { %p25_p2 = scmp.eq.s32.totalorder %s24_s26, 0  ;;  %p34_p1 = scmp.ne.s32.totalorder %s3003_s14, %s2999_s13 }
  0x2a   : > { %p35_p4 = scmp.eq.s32.totalorder %s3007_s15, 0  ;;  %p2840_p6 = scmp.lt.s32.totalorder %s3007_s15, 2 }
  0x2b   : > { %s3122_s17 = scalar_select %p25_p2, %s3003_s14, %s27_s25  }
  0x2c   : > { %p36_p8 = por %p35_p4, %p34_p1  ;;  %p3620_p10 = scmp.eq.s32.totalorder %s3056_s16, 1 }
  0x2d   : > { %s148_s27 = sand.u32 1, %s3003_s14   ;;  %s2818_s28 = sshll.u32 %s3007_s15, 9 }
  0x2e   : > { %p3126_p12 = por %p3620_p10, %p34_p1  ;;  %s2550_s29 = sshll.u32 %s148_s27, 5 }
  0x2f   : > { %s3135_s4 = scalar_lea.hbm %s3589_s0, %s2818_s28  ;;  %s152_s22 = scalar_lea.vmem [#allocation2], %s2550_s29 }
  0x30   : > { %s160_s25 = sshll.u32 %s152_s22, 4  ;;  %p3137_p11 = pnand %p2840_p6, %p36_p8  ;;  %s3141_s25 = int_to_ptr.vmem [resolvable:$true] %s160_s25 }
  0x31   : > { %s149_s5 = scalar_lea.sflag [#allocation3], %s148_s27  ;;  %s2907_s6 = scalar_lea.hbm %s3135_s4, 512 }
  0x32   : > { %p2908_p13 = scmp.ne.s32.totalorder %s3135_s4, %s2907_s6  ;;  %p2909_p0 = pneg %p3137_p11 }
  0x33   : > { %s2912_s9 = scalar_lea.hbm %s3589_s0, 1024  ;;  %p2913_p7 = scmp.lt.u32.totalorder %s3135_s4, %s3589_s0 }
  0x34   : > { %p2910_p3 = pnand %p2909_p0, %p2908_p13  ;;  %p2914_p9 = scmp.lt.u32.totalorder %s2912_s9, %s2907_s6 }
  0x35   : > { %p2916_p1 = scmp.lt.u32.totalorder %s2907_s6, %s3135_s4 }
  0x36   : > { %p2911_p5 = pneg %p2910_p3  ;;  %p2915_p2 = por %p2914_p9, %p2913_p7 }
  0x38   : > { %p2917_p4 = por %p2916_p1, %p2915_p2 }
  0x3a   : > { %p2918_p6 = pnand %p2917_p4, %p2911_p5 }
  0x3c   : > { %2921 = shalt.err (!%p2918_p6)
}
  0x3d   : > { %s2922_s27 = scalar_lea.vmem %s3141_s25, 512  ;;  %s3012_s28 = smov [#allocation2]  }
  0x3e   : > { %p2923_p8 = scmp.ne.s32.totalorder %s3141_s25, %s2922_s27  ;;  %s2927_s29 = sshll.u32 %s3012_s28, 4  ;;  %s2928_s29 = int_to_ptr.vmem [resolvable:$false] %s2927_s29 }
  0x3f   : > { %s2929_s23 = scalar_lea.vmem %s2928_s29, 1024  ;;  %p2930_p3 = scmp.lt.s32.totalorder %s3141_s25, %s2928_s29 }
  0x40   : > { %p2925_p10 = pnand %p2923_p8, %p2909_p0  ;;  %p2931_p7 = scmp.lt.s32.totalorder %s2929_s23, %s2922_s27 }
  0x42   : > { %p2926_p13 = pneg %p2925_p10  ;;  %p2932_p9 = por %p2931_p7, %p2930_p3 }
  0x44   : > { %p2933_p2 = pnand %p2932_p9, %p2926_p13 }
  0x46   : > { %2936 = shalt.err (!%p2933_p2)
}
  0x47   : > { %2834 = dma.hbm_to_vmem [thread:$0]  (!%p3137_p11), %s3135_s4, 512, %s3141_s25, %s149_s5  }
  0x48   : > { %p3623_p5 = scmp.ne.s32.totalorder %s3618_s20, 0 }
  0x4a   : > { %169 = sbr.rel (%p3623_p5) target bundleno = 588 (0x24c), region = 32 }
  0x51   : > { %s3171_s30 = sand.u32 1, %s2999_s13   ;;  %p3624_p0 = scmp.ne.s32.totalorder %s3616_s18, 0 }
  0x52   : > { %s2554_s22 = sshll.u32 %s3171_s30, 5  ;;  %s172_s6 = scalar_lea.sflag [#allocation3], %s3171_s30 }
  0x53   : > { %s3175_s7 = scalar_lea.vmem [#allocation2], %s2554_s22 }
  0x54   : > { %2982 = dma.done.wait (%p3624_p0), %s172_s6, 512  }
  0x55   : > { %2984 = vsyncadd (%p3624_p0), %s172_s6, 4294966784  ;;  %p3625_p11 = scmp.eq.s32.totalorder %s3056_s16, 0 }
  0x57   : > { %2986 = dma.done.wait (%p3625_p11), [#allocation6], 8192   ;;  %p3626_p1 = pmov %p3625_p11 }
  0x58   : > { %v3596_v0 = vmov 0   ;;  %v205_v1 = vld [vmem:[#allocation5] sm:$0xff]  ;;  %v206_v3 = vld [vmem:[#allocation5 + $0x8] sm:$0xff]  ;;  %v207_v63 = vld [vmem:[#allocation5 + $0x10] sm:$0xff]  ;;  %s2556_s18 = sshll.u32 %s3171_s30, 3  ;;  %s2815_s25 = sshll.u32 %s3056_s16, 7 }
  0x59   : > { %2988 = vsyncadd (%p3626_p1), [#allocation6], 4294959104  ;;  %621 = vmatprep.mubr.bf16.mxu0 %v3596_v0  ;;  %662 = vmatprep.mubr.bf16.mxu1 %v3596_v0  ;;  %v209_v2 = vld [vmem:[#allocation5 + $0x20] sm:$0xff]  ;;  %v210_v6 = vld [vmem:[#allocation5 + $0x28] sm:$0xff]  ;;  %s201_s26 = scalar_lea.vmem [#allocation7], %s2556_s18  ;;  %s3545_s10 = scalar_lea.hbm %s3592_s3, %s2815_s25 }
  0x5a   : > { %v3187_v4 = vcombine.high %v205_v1, %v209_v2  ;;  %v3189_v5 = vcombine.low %v205_v1, %v209_v2  ;;  %v213_v7 = vld [vmem:[#allocation5 + $0x40] sm:$0xff]  ;;  %v3191_v9 = vcombine.high %v206_v3, %v210_v6  ;;  %v3193_v10 = vcombine.low %v206_v3, %v210_v6  ;;  %v214_v12 = vld [vmem:[#allocation5 + $0x48] sm:$0xff]  ;;  %v211_v1 = vld [vmem:[#allocation5 + $0x30] sm:$0xff]  ;;  %s2466_s5 = sshll.u32 %s201_s26, 4  ;;  %s2453_s11 = scalar_lea.sflag [#allocation4], %s3171_s30  ;;  %s3547_s5 = int_to_ptr.vmem [resolvable:$true] %s2466_s5 }
  0x5b   : > { %v217_v8 = vld [vmem:[#allocation5 + $0x60] sm:$0xff]  ;;  %v218_v13 = vld [vmem:[#allocation5 + $0x68] sm:$0xff]  ;;  %v208_v2 = vld [vmem:[#allocation5 + $0x18] sm:$0xff]  ;;  %s2937_s27 = scalar_lea.vmem %s3547_s5, 128  ;;  %s3014_s16 = smov [#allocation7]  }
  0x5c   : > { %v3195_v11 = vcombine.high %v213_v7, %v217_v8  ;;  %v221_v14 = vld [vmem:[#allocation5 + $0x80] sm:$0xff]  ;;  %589 = vmatprep.subr.bf16.mxu0 %v3187_v4  ;;  %v3198_v15 = vcombine.high %v214_v12, %v218_v13  ;;  %v222_v17 = vld [vmem:[#allocation5 + $0x88] sm:$0xff]  ;;  %630 = vmatprep.subr.bf16.mxu1 %v3191_v9  ;;  %v3202_v19 = vcombine.low %v213_v7, %v217_v8  ;;  %v212_v3 = vld [vmem:[#allocation5 + $0x38] sm:$0xff]  ;;  %p2938_p4 = scmp.ne.s32.totalorder %s3547_s5, %s2937_s27  ;;  %s2941_s28 = sshll.u32 %s3014_s16, 4  ;;  %s2942_s28 = int_to_ptr.vmem [resolvable:$false] %s2941_s28 }
  0x5d   : > { %v225_v16 = vld [vmem:[#allocation5 + $0xa0] sm:$0xff]  ;;  %v226_v18 = vld [vmem:[#allocation5 + $0xa8] sm:$0xff]  ;;  %590 = vmatpush1.bf16.msra.mxu0 %v3189_v5  ;;  %631 = vmatpush1.bf16.msra.mxu1 %v3193_v10  ;;  %v3206_v20 = vcombine.low %v214_v12, %v218_v13  ;;  %v3281_v12 = vcombine.high %v207_v63, %v211_v1  ;;  %v3284_v13 = vcombine.high %v208_v2, %v212_v3  ;;  %s2943_s29 = scalar_lea.vmem %s2942_s28, 256  ;;  %p2944_p10 = scmp.lt.s32.totalorder %s3547_s5, %s2942_s28 }
  0x5e   : > { %591 = vmatprep.subr.bf16.mxu0 %v3195_v11  ;;  %v3208_v21 = vcombine.high %v221_v14, %v225_v16  ;;  %632 = vmatprep.subr.bf16.mxu1 %v3198_v15  ;;  %v3211_v22 = vcombine.high %v222_v17, %v226_v18  ;;  %v229_v23 = vld [vmem:[#allocation5 + $0xc0] sm:$0xff]  ;;  %v230_v25 = vld [vmem:[#allocation5 + $0xc8] sm:$0xff]  ;;  %v3214_v27 = vcombine.low %v221_v14, %v225_v16  ;;  %v215_v14 = vld [vmem:[#allocation5 + $0x50] sm:$0xff]  ;;  %p2939_p6 = pnand %p2938_p4, %p3126_p12  ;;  %p2945_p13 = scmp.lt.s32.totalorder %s2943_s29, %s2937_s27 }
  0x5f   : > { %v233_v24 = vld [vmem:[#allocation5 + $0xe0] sm:$0xff]  ;;  %v234_v26 = vld [vmem:[#allocation5 + $0xe8] sm:$0xff]  ;;  %v3218_v28 = vcombine.low %v222_v17, %v226_v18  ;;  %v219_v16 = vld [vmem:[#allocation5 + $0x70] sm:$0xff] }
  0x60   : > { %v3220_v29 = vcombine.high %v229_v23, %v233_v24  ;;  %v3223_v30 = vcombine.high %v230_v25, %v234_v26  ;;  %v237_v31 = vld [vmem:[#allocation5 + $0x100] sm:$0xff]  ;;  %v238_v33 = vld [vmem:[#allocation5 + $0x108] sm:$0xff]  ;;  %v3226_v35 = vcombine.low %v229_v23, %v233_v24  ;;  %v3230_v36 = vcombine.low %v230_v25, %v234_v26  ;;  %v216_v18 = vld [vmem:[#allocation5 + $0x58] sm:$0xff]  ;;  %p2940_p8 = pneg %p2939_p6  ;;  %p2946_p3 = por %p2945_p13, %p2944_p10 }
  0x61   : > { %592 = vmatpush1.bf16.msra.mxu0 %v3202_v19  ;;  %633 = vmatpush1.bf16.msra.mxu1 %v3206_v20  ;;  %v241_v32 = vld [vmem:[#allocation5 + $0x120] sm:$0xff]  ;;  %v242_v34 = vld [vmem:[#allocation5 + $0x128] sm:$0xff]  ;;  %v220_v23 = vld [vmem:[#allocation5 + $0x78] sm:$0xff]  ;;  %v3289_v24 = vcombine.low %v207_v63, %v211_v1  ;;  %v3293_v25 = vcombine.low %v208_v2, %v212_v3  ;;  %v3295_v26 = vcombine.high %v215_v14, %v219_v16 }
  0x62   : > { %593 = vmatprep.subr.bf16.mxu0 %v3208_v21  ;;  %634 = vmatprep.subr.bf16.mxu1 %v3211_v22  ;;  %v3232_v37 = vcombine.high %v237_v31, %v241_v32  ;;  %v3235_v38 = vcombine.high %v238_v33, %v242_v34  ;;  %v245_v39 = vld [vmem:[#allocation5 + $0x140] sm:$0xff]  ;;  %v246_v41 = vld [vmem:[#allocation5 + $0x148] sm:$0xff]  ;;  %v3238_v43 = vcombine.low %v237_v31, %v241_v32  ;;  %v223_v32 = vld [vmem:[#allocation5 + $0x90] sm:$0xff]  ;;  %p2947_p7 = pnand %p2946_p3, %p2940_p8 }
  0x63   : > { %v249_v40 = vld [vmem:[#allocation5 + $0x160] sm:$0xff]  ;;  %v250_v42 = vld [vmem:[#allocation5 + $0x168] sm:$0xff]  ;;  %v3242_v44 = vcombine.low %v238_v33, %v242_v34  ;;  %v3298_v31 = vcombine.high %v216_v18, %v220_v23  ;;  %v227_v33 = vld [vmem:[#allocation5 + $0xb0] sm:$0xff] }
  0x64   : > { %v3244_v45 = vcombine.high %v245_v39, %v249_v40  ;;  %v3247_v46 = vcombine.high %v246_v41, %v250_v42  ;;  %v253_v47 = vld [vmem:[#allocation5 + $0x180] sm:$0xff]  ;;  %v254_v49 = vld [vmem:[#allocation5 + $0x188] sm:$0xff]  ;;  %v3250_v51 = vcombine.low %v245_v39, %v249_v40  ;;  %v3254_v52 = vcombine.low %v246_v41, %v250_v42  ;;  %v224_v34 = vld [vmem:[#allocation5 + $0x98] sm:$0xff] }
  0x65   : > { %594 = vmatpush1.bf16.msra.mxu0 %v3214_v27  ;;  %635 = vmatpush1.bf16.msra.mxu1 %v3218_v28  ;;  %v257_v48 = vld [vmem:[#allocation5 + $0x1a0] sm:$0xff]  ;;  %v258_v50 = vld [vmem:[#allocation5 + $0x1a8] sm:$0xff]  ;;  %v228_v39 = vld [vmem:[#allocation5 + $0xb8] sm:$0xff]  ;;  %v3303_v40 = vcombine.low %v215_v14, %v219_v16  ;;  %v3307_v41 = vcombine.low %v216_v18, %v220_v23  ;;  %v3309_v42 = vcombine.high %v223_v32, %v227_v33 }
  0x66   : > { %595 = vmatprep.subr.bf16.mxu0 %v3220_v29  ;;  %636 = vmatprep.subr.bf16.mxu1 %v3223_v30  ;;  %v3256_v53 = vcombine.high %v253_v47, %v257_v48  ;;  %v3259_v54 = vcombine.high %v254_v49, %v258_v50  ;;  %v261_v55 = vld [vmem:[#allocation5 + $0x1c0] sm:$0xff]  ;;  %v262_v57 = vld [vmem:[#allocation5 + $0x1c8] sm:$0xff]  ;;  %v3262_v59 = vcombine.low %v253_v47, %v257_v48  ;;  %v231_v48 = vld [vmem:[#allocation5 + $0xd0] sm:$0xff] }
  0x67   : > { %v265_v56 = vld [vmem:[#allocation5 + $0x1e0] sm:$0xff]  ;;  %v266_v58 = vld [vmem:[#allocation5 + $0x1e8] sm:$0xff]  ;;  %v3266_v60 = vcombine.low %v254_v49, %v258_v50  ;;  %3627 = vst [vmem:[#allocation11_spill] sm:$0xff] %v3303_v40  ;;  %v3312_v47 = vcombine.high %v224_v34, %v228_v39  ;;  %v235_v49 = vld [vmem:[#allocation5 + $0xf0] sm:$0xff] }
  0x68   : > { %v3268_v61 = vcombine.high %v261_v55, %v265_v56  ;;  %v3271_v62 = vcombine.high %v262_v57, %v266_v58  ;;  %v3274_v6 = vcombine.low %v261_v55, %v265_v56  ;;  %v203_v7 = vld [vmem:[%s3175_s7] sm:$0xff]  ;;  %v3279_v8 = vcombine.low %v262_v57, %v266_v58  ;;  %v232_v50 = vld [vmem:[#allocation5 + $0xd8] sm:$0xff]  ;;  %v239_v1 = vld [vmem:[#allocation5 + $0x110] sm:$0xff] }
  0x69   : > { %596 = vmatpush1.bf16.msra.mxu0 %v3226_v35  ;;  %637 = vmatpush1.bf16.msra.mxu1 %v3230_v36  ;;  %v3286_v17 = vpack.c.bf16 %v203_v7, %v203_v7  ;;  %v236_v55 = vld [vmem:[#allocation5 + $0xf8] sm:$0xff]  ;;  %v3317_v56 = vcombine.low %v223_v32, %v227_v33  ;;  %v3321_v57 = vcombine.low %v224_v34, %v228_v39  ;;  %v243_v2 = vld [vmem:[#allocation5 + $0x130] sm:$0xff] }
  0x6a   : > { %597 = vmatprep.subr.bf16.mxu0 %v3232_v37  ;;  %638 = vmatprep.subr.bf16.mxu1 %v3235_v38  ;;  %v3323_v58 = vcombine.high %v231_v48, %v235_v49  ;;  %v3326_v63 = vcombine.high %v232_v50, %v236_v55  ;;  %v240_v3 = vld [vmem:[#allocation5 + $0x118] sm:$0xff]  ;;  %v3329_v14 = vcombine.low %v231_v48, %v235_v49  ;;  %v247_v32 = vld [vmem:[#allocation5 + $0x150] sm:$0xff] }
  0x6b   : > { %3628 = vst [vmem:[#allocation12_spill] sm:$0xff] %v3317_v56  ;;  %3629 = vst [vmem:[#allocation13_spill] sm:$0xff] %v3321_v57  ;;  %v244_v7 = vld [vmem:[#allocation5 + $0x138] sm:$0xff]  ;;  %v3333_v16 = vcombine.low %v232_v50, %v236_v55  ;;  %v3335_v18 = vcombine.high %v239_v1, %v243_v2  ;;  %v251_v33 = vld [vmem:[#allocation5 + $0x170] sm:$0xff]  ;;  %v3341_v48 = vcombine.low %v239_v1, %v243_v2 }
  0x6c   : > { %3630 = vst [vmem:[#allocation14_spill] sm:$0xff] %v3323_v58  ;;  %3631 = vst [vmem:[#allocation15_spill] sm:$0xff] %v3326_v63  ;;  %v3338_v23 = vcombine.high %v240_v3, %v244_v7  ;;  %v248_v34 = vld [vmem:[#allocation5 + $0x158] sm:$0xff]  ;;  %v3345_v49 = vcombine.low %v240_v3, %v244_v7  ;;  %v3347_v50 = vcombine.high %v247_v32, %v251_v33 }
  0x6d   : > { %598 = vmatpush1.bf16.msra.mxu0 %v3238_v43  ;;  %639 = vmatpush1.bf16.msra.mxu1 %v3242_v44  ;;  %3632 = vst [vmem:[#allocation16_spill] sm:$0xff] %v3329_v14  ;;  %3633 = vst [vmem:[#allocation17_spill] sm:$0xff] %v3333_v16  ;;  %v252_v39 = vld [vmem:[#allocation5 + $0x178] sm:$0xff]  ;;  %v3353_v1 = vcombine.low %v247_v32, %v251_v33 }
  0x6e   : > { %599 = vmatprep.subr.bf16.mxu0 %v3244_v45  ;;  %640 = vmatprep.subr.bf16.mxu1 %v3247_v46  ;;  %3634 = vst [vmem:[#allocation18_spill] sm:$0xff] %v3335_v18  ;;  %3635 = vst [vmem:[#allocation19_spill] sm:$0xff] %v3338_v23  ;;  %v3350_v55 = vcombine.high %v248_v34, %v252_v39  ;;  %v3357_v2 = vcombine.low %v248_v34, %v252_v39 }
  0x70   : > { %3636 = vst [vmem:[#allocation20_spill] sm:$0xff] %v3350_v55 }
  0x71   : > { %600 = vmatpush1.bf16.msra.mxu0 %v3250_v51  ;;  %641 = vmatpush1.bf16.msra.mxu1 %v3254_v52 }
  0x72   : > { %601 = vmatprep.subr.bf16.mxu0 %v3256_v53  ;;  %642 = vmatprep.subr.bf16.mxu1 %v3259_v54 }
  0x75   : > { %602 = vmatpush1.bf16.msra.mxu0 %v3262_v59  ;;  %643 = vmatpush1.bf16.msra.mxu1 %v3266_v60 }
  0x76   : > { %603 = vmatprep.subr.bf16.mxu0 %v3268_v61  ;;  %644 = vmatprep.subr.bf16.mxu1 %v3271_v62 }
  0x79   : > { %604 = vmatpush1.bf16.msra.mxu0 %v3274_v6  ;;  %645 = vmatpush1.bf16.msra.mxu1 %v3279_v8 }
  0x7a   : > { %671 = vmatprep.subr.bf16.mxu0 %v3281_v12  ;;  %712 = vmatprep.subr.bf16.mxu1 %v3284_v13 }
  0x7c   : > { %622 = vmatmul.mubr.bf16.vlgmr.msra.gmra.mrb[0].mxu0 %v3286_v17  ;;  %663 = vmatmul.mubr.bf16.vlgmr.msra.gmra.mrb[0].mxu1 %v3286_v17 }
  0x7d   : > { %672 = vmatpush1.bf16.msra.mxu0 %v3289_v24  ;;  %713 = vmatpush1.bf16.msra.mxu1 %v3293_v25 }
  0x7e   : > { %673 = vmatprep.subr.bf16.mxu0 %v3295_v26  ;;  %714 = vmatprep.subr.bf16.mxu1 %v3298_v31 }
  0x7f   : > { %703 = vmatprep.mubr.bf16.mxu0 %v3596_v0  ;;  %744 = vmatprep.mubr.bf16.mxu1 %v3596_v0  ;;  %v255_v0 = vld [vmem:[#allocation5 + $0x190] sm:$0xff] }
  0x81   : > { %674 = vmatpush1.bf16.msra.mxu0 %v3303_v40  ;;  %715 = vmatpush1.bf16.msra.mxu1 %v3307_v41 }
  0x82   : > { %675 = vmatprep.subr.bf16.mxu0 %v3309_v42  ;;  %716 = vmatprep.subr.bf16.mxu1 %v3312_v47 }
  0x85   : > { %676 = vmatpush1.bf16.msra.mxu0 %v3317_v56  ;;  %717 = vmatpush1.bf16.msra.mxu1 %v3321_v57  ;;  %v260_v57 = vld [vmem:[#allocation5 + $0x1b8] sm:$0xff] }
  0x86   : > { %677 = vmatprep.subr.bf16.mxu0 %v3323_v58  ;;  %718 = vmatprep.subr.bf16.mxu1 %v3326_v63  ;;  %v259_v63 = vld [vmem:[#allocation5 + $0x1b0] sm:$0xff]  ;;  %v256_v58 = vld [vmem:[#allocation5 + $0x198] sm:$0xff] }
  0x87   : > { %v3359_v3 = vcombine.high %v255_v0, %v259_v63  ;;  %v3362_v7 = vcombine.high %v256_v58, %v260_v57  ;;  %v3365_v32 = vcombine.low %v255_v0, %v259_v63  ;;  %v3369_v33 = vcombine.low %v256_v58, %v260_v57  ;;  %v3638_v63 = vld [vmem:[#allocation13_spill] sm:$0xff] }
  0x88   : > { %v3637_v57 = vmov 0  }
  0x89   : > { %678 = vmatpush1.bf16.msra.mxu0 %v3329_v14  ;;  %719 = vmatpush1.bf16.msra.mxu1 %v3333_v16  ;;  %v264_v16 = vld [vmem:[#allocation5 + $0x1d8] sm:$0xff] }
  0x8a   : > { %679 = vmatprep.subr.bf16.mxu0 %v3335_v18  ;;  %720 = vmatprep.subr.bf16.mxu1 %v3338_v23  ;;  %v263_v23 = vld [vmem:[#allocation5 + $0x1d0] sm:$0xff]  ;;  %v268_v14 = vld [vmem:[#allocation5 + $0x1f8] sm:$0xff] }
  0x8b   : > { %v267_v18 = vld [vmem:[#allocation5 + $0x1f0] sm:$0xff]  ;;  %v3374_v39 = vcombine.high %v264_v16, %v268_v14  ;;  %v3381_v0 = vcombine.low %v264_v16, %v268_v14  ;;  %v3639_v14 = vld [vmem:[#allocation14_spill] sm:$0xff] }
  0x8c   : > { %v3371_v34 = vcombine.high %v263_v23, %v267_v18  ;;  %v3640_v16 = vld [vmem:[#allocation15_spill] sm:$0xff] }
  0x8d   : > { %680 = vmatpush1.bf16.msra.mxu0 %v3341_v48  ;;  %721 = vmatpush1.bf16.msra.mxu1 %v3345_v49 }
  0x8e   : > { %681 = vmatprep.subr.bf16.mxu0 %v3347_v50  ;;  %722 = vmatprep.subr.bf16.mxu1 %v3350_v55  ;;  %v3377_v55 = vcombine.low %v263_v23, %v267_v18  ;;  %v3641_v18 = vld [vmem:[#allocation16_spill] sm:$0xff]  ;;  %v3642_v23 = vld [vmem:[#allocation17_spill] sm:$0xff] }
  0x91   : > { %682 = vmatpush1.bf16.msra.mxu0 %v3353_v1  ;;  %723 = vmatpush1.bf16.msra.mxu1 %v3357_v2 }
  0x92   : > { %683 = vmatprep.subr.bf16.mxu0 %v3359_v3  ;;  %724 = vmatprep.subr.bf16.mxu1 %v3362_v7 }
  0x95   : > { %684 = vmatpush1.bf16.msra.mxu0 %v3365_v32  ;;  %725 = vmatpush1.bf16.msra.mxu1 %v3369_v33 }
  0x96   : > { %685 = vmatprep.subr.bf16.mxu0 %v3371_v34  ;;  %726 = vmatprep.subr.bf16.mxu1 %v3374_v39 }
  0x99   : > { %686 = vmatpush1.bf16.msra.mxu0 %v3377_v55  ;;  %727 = vmatpush1.bf16.msra.mxu1 %v3381_v0 }
  0x9a   : > { %1147 = vmatprep.subr.bf16.mxu0 %v3187_v4  ;;  %1188 = vmatprep.subr.bf16.mxu1 %v3191_v9 }
  0x9c   : > { %704 = vmatmul.mubr.bf16.vlgmr.msra.gmra.mrb[4].mxu0 %v3286_v17  ;;  %745 = vmatmul.mubr.bf16.vlgmr.msra.gmra.mrb[4].mxu1 %v3286_v17  ;;  %v761_v17 = vld [vmem:[%s3175_s7 + $0x8] sm:$0xff] }
  0x9d   : > { %1148 = vmatpush1.bf16.msra.mxu0 %v3189_v5  ;;  %1189 = vmatpush1.bf16.msra.mxu1 %v3193_v10  ;;  %v762_v58 = vpack.c.bf16 %v761_v17, %v761_v17  ;;  %v3643_v17 = vld [vmem:[#allocation18_spill] sm:$0xff] }
  0x9e   : > { %1149 = vmatprep.subr.bf16.mxu0 %v3195_v11  ;;  %1190 = vmatprep.subr.bf16.mxu1 %v3198_v15 }
  0x9f   : > { %1179 = vmatprep.mubr.bf16.mxu0 %v3637_v57  ;;  %1220 = vmatprep.mubr.bf16.mxu1 %v3637_v57 }
  0xa1   : > { %1150 = vmatpush1.bf16.msra.mxu0 %v3202_v19  ;;  %1191 = vmatpush1.bf16.msra.mxu1 %v3206_v20 }
  0xa2   : > { %1151 = vmatprep.subr.bf16.mxu0 %v3208_v21  ;;  %1192 = vmatprep.subr.bf16.mxu1 %v3211_v22 }
  0xa5   : > { %1152 = vmatpush1.bf16.msra.mxu0 %v3214_v27  ;;  %1193 = vmatpush1.bf16.msra.mxu1 %v3218_v28 }
  0xa6   : > { %1153 = vmatprep.subr.bf16.mxu0 %v3220_v29  ;;  %1194 = vmatprep.subr.bf16.mxu1 %v3223_v30 }
  0xa9   : > { %1154 = vmatpush1.bf16.msra.mxu0 %v3226_v35  ;;  %1195 = vmatpush1.bf16.msra.mxu1 %v3230_v36 }
  0xaa   : > { %1155 = vmatprep.subr.bf16.mxu0 %v3232_v37  ;;  %1196 = vmatprep.subr.bf16.mxu1 %v3235_v38 }
  0xad   : > { %1156 = vmatpush1.bf16.msra.mxu0 %v3238_v43  ;;  %1197 = vmatpush1.bf16.msra.mxu1 %v3242_v44 }
  0xae   : > { %1157 = vmatprep.subr.bf16.mxu0 %v3244_v45  ;;  %1198 = vmatprep.subr.bf16.mxu1 %v3247_v46 }
  0xb1   : > { %1158 = vmatpush1.bf16.msra.mxu0 %v3250_v51  ;;  %1199 = vmatpush1.bf16.msra.mxu1 %v3254_v52 }
  0xb2   : > { %1159 = vmatprep.subr.bf16.mxu0 %v3256_v53  ;;  %1200 = vmatprep.subr.bf16.mxu1 %v3259_v54 }
  0xb5   : > { %1160 = vmatpush1.bf16.msra.mxu0 %v3262_v59  ;;  %1201 = vmatpush1.bf16.msra.mxu1 %v3266_v60 }
  0xb6   : > { %1161 = vmatprep.subr.bf16.mxu0 %v3268_v61  ;;  %1202 = vmatprep.subr.bf16.mxu1 %v3271_v62 }
  0xb9   : > { %1162 = vmatpush1.bf16.msra.mxu0 %v3274_v6  ;;  %1203 = vmatpush1.bf16.msra.mxu1 %v3279_v8 }
  0xba   : > { %1229 = vmatprep.subr.bf16.mxu0 %v3281_v12  ;;  %1270 = vmatprep.subr.bf16.mxu1 %v3284_v13 }
  0xbc   : > { %1180 = vmatmul.mubr.bf16.vlgmr.msra.gmra.mrb[8].mxu0 %v762_v58  ;;  %1221 = vmatmul.mubr.bf16.vlgmr.msra.gmra.mrb[8].mxu1 %v762_v58 }
  0xbd   : > { %1230 = vmatpush1.bf16.msra.mxu0 %v3289_v24  ;;  %1271 = vmatpush1.bf16.msra.mxu1 %v3293_v25 }
  0xbe   : > { %1231 = vmatprep.subr.bf16.mxu0 %v3295_v26  ;;  %1272 = vmatprep.subr.bf16.mxu1 %v3298_v31 }
  0xbf   : > { %1261 = vmatprep.mubr.bf16.mxu0 %v3637_v57  ;;  %1302 = vmatprep.mubr.bf16.mxu1 %v3637_v57 }
  0xc1   : > { %1232 = vmatpush1.bf16.msra.mxu0 %v3303_v40  ;;  %1273 = vmatpush1.bf16.msra.mxu1 %v3307_v41  ;;  %v3644_v40 = vld [vmem:[#allocation19_spill] sm:$0xff] }
  0xc2   : > { %1233 = vmatprep.subr.bf16.mxu0 %v3309_v42  ;;  %1274 = vmatprep.subr.bf16.mxu1 %v3312_v47 }
  0xc5   : > { %1234 = vmatpush1.bf16.msra.mxu0 %v3317_v56  ;;  %1275 = vmatpush1.bf16.msra.mxu1 %v3638_v63  ;;  %v3645_v56 = vld [vmem:[#allocation20_spill] sm:$0xff] }
  0xc6   : > { %1235 = vmatprep.subr.bf16.mxu0 %v3639_v14  ;;  %1276 = vmatprep.subr.bf16.mxu1 %v3640_v16 }
  0xc9   : > { %1236 = vmatpush1.bf16.msra.mxu0 %v3641_v18  ;;  %1277 = vmatpush1.bf16.msra.mxu1 %v3642_v23 }
  0xca   : > { %1237 = vmatprep.subr.bf16.mxu0 %v3643_v17  ;;  %1278 = vmatprep.subr.bf16.mxu1 %v3644_v40 }
  0xcd   : > { %1238 = vmatpush1.bf16.msra.mxu0 %v3341_v48  ;;  %1279 = vmatpush1.bf16.msra.mxu1 %v3345_v49 }
  0xce   : > { %1239 = vmatprep.subr.bf16.mxu0 %v3347_v50  ;;  %1280 = vmatprep.subr.bf16.mxu1 %v3645_v56 }
  0xd1   : > { %1240 = vmatpush1.bf16.msra.mxu0 %v3353_v1  ;;  %1281 = vmatpush1.bf16.msra.mxu1 %v3357_v2 }
  0xd2   : > { %1241 = vmatprep.subr.bf16.mxu0 %v3359_v3  ;;  %1282 = vmatprep.subr.bf16.mxu1 %v3362_v7 }
  0xd5   : > { %1242 = vmatpush1.bf16.msra.mxu0 %v3365_v32  ;;  %1283 = vmatpush1.bf16.msra.mxu1 %v3369_v33 }
  0xd6   : > { %1243 = vmatprep.subr.bf16.mxu0 %v3371_v34  ;;  %1284 = vmatprep.subr.bf16.mxu1 %v3374_v39 }
  0xd9   : > { %1244 = vmatpush1.bf16.msra.mxu0 %v3377_v55  ;;  %1285 = vmatpush1.bf16.msra.mxu1 %v3381_v0 }
  0xda   : > { %1707 = vmatprep.subr.bf16.mxu0 %v3187_v4  ;;  %1748 = vmatprep.subr.bf16.mxu1 %v3191_v9  ;;  %v1321_v4 = vld [vmem:[%s3175_s7 + $0x10] sm:$0xff] }
  0xdb   : > { %v3646_v9 = vld [vmem:[#allocation11_spill] sm:$0xff] }
  0xdc   : > { %1262 = vmatmul.mubr.bf16.vlgmr.msra.gmra.mrb[12].mxu0 %v762_v58  ;;  %1303 = vmatmul.mubr.bf16.vlgmr.msra.gmra.mrb[12].mxu1 %v762_v58 }
  0xdd   : > { %1708 = vmatpush1.bf16.msra.mxu0 %v3189_v5  ;;  %1749 = vmatpush1.bf16.msra.mxu1 %v3193_v10  ;;  %v1322_v5 = vpack.c.bf16 %v1321_v4, %v1321_v4  ;;  %v3647_v10 = vld [vmem:[#allocation12_spill] sm:$0xff] }
  0xde   : > { %1709 = vmatprep.subr.bf16.mxu0 %v3195_v11  ;;  %1750 = vmatprep.subr.bf16.mxu1 %v3198_v15  ;;  %v1883_v11 = vld [vmem:[#allocation5] sm:$0xff] }
  0xdf   : > { %1739 = vmatprep.mubr.bf16.mxu0 %v3637_v57  ;;  %1780 = vmatprep.mubr.bf16.mxu1 %v3637_v57  ;;  %v1887_v15 = vld [vmem:[#allocation5 + $0x20] sm:$0xff] }
  0xe1   : > { %1710 = vmatpush1.bf16.msra.mxu0 %v3202_v19  ;;  %1751 = vmatpush1.bf16.msra.mxu1 %v3206_v20  ;;  %v1884_v19 = vld [vmem:[#allocation5 + $0x8] sm:$0xff] }
  0xe2   : > { %1711 = vmatprep.subr.bf16.mxu0 %v3208_v21  ;;  %1752 = vmatprep.subr.bf16.mxu1 %v3211_v22  ;;  %v1888_v20 = vld [vmem:[#allocation5 + $0x28] sm:$0xff]  ;;  %v2750_v21 = vcombine.high %v1883_v11, %v1887_v15 }
  0xe3   : > { %v2752_v22 = vcombine.high %v1884_v19, %v1888_v20 }
  0xe5   : > { %1712 = vmatpush1.bf16.msra.mxu0 %v3214_v27  ;;  %1753 = vmatpush1.bf16.msra.mxu1 %v3218_v28  ;;  %v1891_v27 = vld [vmem:[#allocation5 + $0x40] sm:$0xff] }
  0xe6   : > { %1713 = vmatprep.subr.bf16.mxu0 %v3220_v29  ;;  %1754 = vmatprep.subr.bf16.mxu1 %v3223_v30  ;;  %v1895_v28 = vld [vmem:[#allocation5 + $0x60] sm:$0xff]  ;;  %v1892_v29 = vld [vmem:[#allocation5 + $0x48] sm:$0xff] }
  0xe7   : > { %v1896_v30 = vld [vmem:[#allocation5 + $0x68] sm:$0xff] }
  0xe9   : > { %1714 = vmatpush1.bf16.msra.mxu0 %v3226_v35  ;;  %1755 = vmatpush1.bf16.msra.mxu1 %v3230_v36  ;;  %v2749_v35 = vcombine.low %v1883_v11, %v1887_v15  ;;  %v2751_v36 = vcombine.low %v1884_v19, %v1888_v20  ;;  %v1889_v11 = vld [vmem:[#allocation5 + $0x30] sm:$0xff]  ;;  %v1886_v15 = vld [vmem:[#allocation5 + $0x18] sm:$0xff] }
  0xea   : > { %1715 = vmatprep.subr.bf16.mxu0 %v3232_v37  ;;  %1756 = vmatprep.subr.bf16.mxu1 %v3235_v38  ;;  %v2758_v37 = vcombine.high %v1891_v27, %v1895_v28  ;;  %v2760_v38 = vcombine.high %v1892_v29, %v1896_v30  ;;  %v1890_v19 = vld [vmem:[#allocation5 + $0x38] sm:$0xff] }
  0xed   : > { %1716 = vmatpush1.bf16.msra.mxu0 %v3238_v43  ;;  %1757 = vmatpush1.bf16.msra.mxu1 %v3242_v44  ;;  %v1899_v43 = vld [vmem:[#allocation5 + $0x80] sm:$0xff] }
  0xee   : > { %1717 = vmatprep.subr.bf16.mxu0 %v3244_v45  ;;  %1758 = vmatprep.subr.bf16.mxu1 %v3247_v46  ;;  %v1903_v44 = vld [vmem:[#allocation5 + $0xa0] sm:$0xff]  ;;  %v1900_v45 = vld [vmem:[#allocation5 + $0x88] sm:$0xff] }
  0xef   : > { %v1904_v46 = vld [vmem:[#allocation5 + $0xa8] sm:$0xff] }
  0xf1   : > { %1718 = vmatpush1.bf16.msra.mxu0 %v3250_v51  ;;  %1759 = vmatpush1.bf16.msra.mxu1 %v3254_v52  ;;  %v2757_v51 = vcombine.low %v1891_v27, %v1895_v28  ;;  %v2759_v52 = vcombine.low %v1892_v29, %v1896_v30  ;;  %v2756_v28 = vcombine.high %v1886_v15, %v1890_v19  ;;  %v1893_v29 = vld [vmem:[#allocation5 + $0x50] sm:$0xff] }
  0xf2   : > { %1719 = vmatprep.subr.bf16.mxu0 %v3256_v53  ;;  %1760 = vmatprep.subr.bf16.mxu1 %v3259_v54  ;;  %v2766_v53 = vcombine.high %v1899_v43, %v1903_v44  ;;  %v2768_v54 = vcombine.high %v1900_v45, %v1904_v46  ;;  %v1897_v30 = vld [vmem:[#allocation5 + $0x70] sm:$0xff] }
  0xf5   : > { %1720 = vmatpush1.bf16.msra.mxu0 %v3262_v59  ;;  %1761 = vmatpush1.bf16.msra.mxu1 %v3266_v60  ;;  %v1907_v59 = vld [vmem:[#allocation5 + $0xc0] sm:$0xff] }
  0xf6   : > { %1721 = vmatprep.subr.bf16.mxu0 %v3268_v61  ;;  %1762 = vmatprep.subr.bf16.mxu1 %v3271_v62  ;;  %v1911_v60 = vld [vmem:[#allocation5 + $0xe0] sm:$0xff]  ;;  %v1908_v61 = vld [vmem:[#allocation5 + $0xc8] sm:$0xff] }
  0xf7   : > { %v1912_v62 = vld [vmem:[#allocation5 + $0xe8] sm:$0xff] }
  0xf9   : > { %1722 = vmatpush1.bf16.msra.mxu0 %v3274_v6  ;;  %1763 = vmatpush1.bf16.msra.mxu1 %v3279_v8  ;;  %v2765_v6 = vcombine.low %v1899_v43, %v1903_v44  ;;  %v2767_v8 = vcombine.low %v1900_v45, %v1904_v46  ;;  %v2755_v43 = vcombine.low %v1886_v15, %v1890_v19  ;;  %v1901_v46 = vld [vmem:[#allocation5 + $0x90] sm:$0xff] }
  0xfa   : > { %1789 = vmatprep.subr.bf16.mxu0 %v3281_v12  ;;  %1830 = vmatprep.subr.bf16.mxu1 %v3284_v13  ;;  %v2774_v12 = vcombine.high %v1907_v59, %v1911_v60  ;;  %v2776_v13 = vcombine.high %v1908_v61, %v1912_v62  ;;  %v2762_v44 = vcombine.high %v1893_v29, %v1897_v30 }
  0xfc   : > { %1740 = vmatmul.mubr.bf16.vlgmr.msra.gmra.mrb[16].mxu0 %v1322_v5  ;;  %1781 = vmatmul.mubr.bf16.vlgmr.msra.gmra.mrb[16].mxu1 %v1322_v5 }
  0xfd   : > { %1790 = vmatpush1.bf16.msra.mxu0 %v3289_v24  ;;  %1831 = vmatpush1.bf16.msra.mxu1 %v3293_v25  ;;  %v1915_v24 = vld [vmem:[#allocation5 + $0x100] sm:$0xff] }
  0xfe   : > { %1791 = vmatprep.subr.bf16.mxu0 %v3295_v26  ;;  %1832 = vmatprep.subr.bf16.mxu1 %v3298_v31  ;;  %v1919_v25 = vld [vmem:[#allocation5 + $0x120] sm:$0xff]  ;;  %v1916_v26 = vld [vmem:[#allocation5 + $0x108] sm:$0xff] }
  0xff   : > { %1821 = vmatprep.mubr.bf16.mxu0 %v3637_v57  ;;  %1862 = vmatprep.mubr.bf16.mxu1 %v3637_v57  ;;  %v1920_v31 = vld [vmem:[#allocation5 + $0x128] sm:$0xff] }
 0x101   : > { %1792 = vmatpush1.bf16.msra.mxu0 %v3646_v9  ;;  %1833 = vmatpush1.bf16.msra.mxu1 %v3307_v41  ;;  %v2775_v41 = vcombine.low %v1908_v61, %v1912_v62  ;;  %v1909_v62 = vld [vmem:[#allocation5 + $0xd0] sm:$0xff] }
 0x102   : > { %1793 = vmatprep.subr.bf16.mxu0 %v3309_v42  ;;  %1834 = vmatprep.subr.bf16.mxu1 %v3312_v47  ;;  %v2782_v42 = vcombine.high %v1915_v24, %v1919_v25  ;;  %v2784_v47 = vcombine.high %v1916_v26, %v1920_v31 }
 0x105   : > { %1794 = vmatpush1.bf16.msra.mxu0 %v3647_v10  ;;  %1835 = vmatpush1.bf16.msra.mxu1 %v3638_v63  ;;  %v1885_v10 = vld [vmem:[#allocation5 + $0x10] sm:$0xff] }
 0x106   : > { %1795 = vmatprep.subr.bf16.mxu0 %v3639_v14  ;;  %1836 = vmatprep.subr.bf16.mxu1 %v3640_v16  ;;  %v1939_v14 = vld [vmem:[#allocation5 + $0x1c0] sm:$0xff]  ;;  %v2754_v27 = vcombine.high %v1885_v10, %v1889_v11 }
 0x107   : > { %v1943_v16 = vld [vmem:[#allocation5 + $0x1e0] sm:$0xff] }
 0x108   : > { %v2805_v20 = vcombine.low %v1939_v14, %v1943_v16 }
 0x109   : > { %1796 = vmatpush1.bf16.msra.mxu0 %v3641_v18  ;;  %1837 = vmatpush1.bf16.msra.mxu1 %v3642_v23  ;;  %v1940_v18 = vld [vmem:[#allocation5 + $0x1c8] sm:$0xff] }
 0x10a   : > { %1797 = vmatprep.subr.bf16.mxu0 %v3643_v17  ;;  %1838 = vmatprep.subr.bf16.mxu1 %v3644_v40  ;;  %v2773_v40 = vcombine.low %v1907_v59, %v1911_v60  ;;  %v1944_v23 = vld [vmem:[#allocation5 + $0x1e8] sm:$0xff] }
 0x10b   : > { %v2808_v9 = vcombine.high %v1940_v18, %v1944_v23 }
 0x10d   : > { %1798 = vmatpush1.bf16.msra.mxu0 %v3341_v48  ;;  %1839 = vmatpush1.bf16.msra.mxu1 %v3345_v49  ;;  %v1927_v48 = vld [vmem:[#allocation5 + $0x160] sm:$0xff]  ;;  %v1924_v49 = vld [vmem:[#allocation5 + $0x148] sm:$0xff] }
 0x10e   : > { %1799 = vmatprep.subr.bf16.mxu0 %v3347_v50  ;;  %1840 = vmatprep.subr.bf16.mxu1 %v3645_v56  ;;  %v1923_v56 = vld [vmem:[#allocation5 + $0x140] sm:$0xff]  ;;  %v1928_v50 = vld [vmem:[#allocation5 + $0x168] sm:$0xff] }
 0x111   : > { %1800 = vmatpush1.bf16.msra.mxu0 %v3353_v1  ;;  %1841 = vmatpush1.bf16.msra.mxu1 %v3357_v2  ;;  %v2783_v1 = vcombine.low %v1916_v26, %v1920_v31  ;;  %v2790_v2 = vcombine.high %v1923_v56, %v1927_v48  ;;  %v1917_v31 = vld [vmem:[#allocation5 + $0x110] sm:$0xff] }
 0x112   : > { %1801 = vmatprep.subr.bf16.mxu0 %v3359_v3  ;;  %1842 = vmatprep.subr.bf16.mxu1 %v3362_v7  ;;  %v2792_v3 = vcombine.high %v1924_v49, %v1928_v50  ;;  %v1931_v7 = vld [vmem:[#allocation5 + $0x180] sm:$0xff] }
 0x115   : > { %1802 = vmatpush1.bf16.msra.mxu0 %v3365_v32  ;;  %1843 = vmatpush1.bf16.msra.mxu1 %v3369_v33  ;;  %v1935_v32 = vld [vmem:[#allocation5 + $0x1a0] sm:$0xff]  ;;  %v1932_v33 = vld [vmem:[#allocation5 + $0x188] sm:$0xff] }
 0x116   : > { %1803 = vmatprep.subr.bf16.mxu0 %v3371_v34  ;;  %1844 = vmatprep.subr.bf16.mxu1 %v3374_v39  ;;  %v1936_v34 = vld [vmem:[#allocation5 + $0x1a8] sm:$0xff]  ;;  %v2789_v39 = vcombine.low %v1923_v56, %v1927_v48  ;;  %v2798_v58 = vcombine.high %v1931_v7, %v1935_v32  ;;  %v2797_v17 = vcombine.low %v1931_v7, %v1935_v32 }
 0x117   : > { %v2800_v63 = vcombine.high %v1932_v33, %v1936_v34  ;;  %v2799_v4 = vcombine.low %v1932_v33, %v1936_v34  ;;  %v1933_v33 = vld [vmem:[#allocation5 + $0x190] sm:$0xff] }
 0x118   : > { %v1937_v34 = vld [vmem:[#allocation5 + $0x1b0] sm:$0xff] }
 0x119   : > { %1804 = vmatpush1.bf16.msra.mxu0 %v3377_v55  ;;  %1845 = vmatpush1.bf16.msra.mxu1 %v3381_v0  ;;  %v2781_v55 = vcombine.low %v1915_v24, %v1919_v25  ;;  %v2791_v0 = vcombine.low %v1924_v49, %v1928_v50  ;;  %v1925_v49 = vld [vmem:[#allocation5 + $0x150] sm:$0xff] }
 0x11a   : > { %2267 = vmatprep.subr.bf16.mxu0 %v2750_v21  ;;  %2308 = vmatprep.subr.bf16.mxu1 %v2752_v22  ;;  %v1881_v21 = vld [vmem:[%s3175_s7 + $0x18] sm:$0xff]  ;;  %v2807_v22 = vcombine.low %v1940_v18, %v1944_v23  ;;  %v1929_v50 = vld [vmem:[#allocation5 + $0x170] sm:$0xff] }
 0x11b   : > { %v2794_v7 = vcombine.high %v1925_v49, %v1929_v50  ;;  %v1941_v23 = vld [vmem:[#allocation5 + $0x1d0] sm:$0xff] }
 0x11c   : > { %1822 = vmatmul.mubr.bf16.vlgmr.msra.gmra.mrb[20].mxu0 %v1322_v5  ;;  %1863 = vmatmul.mubr.bf16.vlgmr.msra.gmra.mrb[20].mxu1 %v1322_v5  ;;  %v2806_v5 = vcombine.high %v1939_v14, %v1943_v16  ;;  %v2802_v14 = vcombine.high %v1933_v33, %v1937_v34 }
 0x11d   : > { %2268 = vmatpush1.bf16.msra.mxu0 %v2749_v35  ;;  %2309 = vmatpush1.bf16.msra.mxu1 %v2751_v36  ;;  %v3529_v35 = vpack.c.bf16 %v1881_v21, %v1881_v21  ;;  %v1894_v36 = vld [vmem:[#allocation5 + $0x58] sm:$0xff] }
 0x11e   : > { %2269 = vmatprep.subr.bf16.mxu0 %v2758_v37  ;;  %2310 = vmatprep.subr.bf16.mxu1 %v2760_v38  ;;  %v1898_v37 = vld [vmem:[#allocation5 + $0x78] sm:$0xff]  ;;  %v2753_v38 = vcombine.low %v1885_v10, %v1889_v11 }
 0x11f   : > { %2299 = vmatprep.mubr.bf16.mxu0 %v3637_v57  ;;  %2340 = vmatprep.mubr.bf16.mxu1 %v3637_v57  ;;  %v2764_v45 = vcombine.high %v1894_v36, %v1898_v37  ;;  %v2763_v59 = vcombine.low %v1894_v36, %v1898_v37  ;;  %v1946_v10 = vld [vmem:[#allocation5 + $0x1f8] sm:$0xff] }
 0x121   : > { %2270 = vmatpush1.bf16.msra.mxu0 %v2757_v51  ;;  %2311 = vmatpush1.bf16.msra.mxu1 %v2759_v52  ;;  %v1905_v51 = vld [vmem:[#allocation5 + $0xb0] sm:$0xff]  ;;  %v1902_v52 = vld [vmem:[#allocation5 + $0x98] sm:$0xff] }
 0x122   : > { %2271 = vmatprep.subr.bf16.mxu0 %v2766_v53  ;;  %2312 = vmatprep.subr.bf16.mxu1 %v2768_v54  ;;  %v1906_v53 = vld [vmem:[#allocation5 + $0xb8] sm:$0xff]  ;;  %v2761_v54 = vcombine.low %v1893_v29, %v1897_v30  ;;  %v2770_v60 = vcombine.high %v1901_v46, %v1905_v51 }
 0x123   : > { %v2772_v61 = vcombine.high %v1902_v52, %v1906_v53  ;;  %v2771_v24 = vcombine.low %v1902_v52, %v1906_v53 }
 0x125   : > { %2272 = vmatpush1.bf16.msra.mxu0 %v2765_v6  ;;  %2313 = vmatpush1.bf16.msra.mxu1 %v2767_v8  ;;  %v1913_v6 = vld [vmem:[#allocation5 + $0xf0] sm:$0xff]  ;;  %v1910_v8 = vld [vmem:[#allocation5 + $0xd8] sm:$0xff] }
 0x126   : > { %2273 = vmatprep.subr.bf16.mxu0 %v2774_v12  ;;  %2314 = vmatprep.subr.bf16.mxu1 %v2776_v13  ;;  %v1914_v12 = vld [vmem:[#allocation5 + $0xf8] sm:$0xff]  ;;  %v2769_v13 = vcombine.low %v1901_v46, %v1905_v51  ;;  %v2778_v25 = vcombine.high %v1909_v62, %v1913_v6 }
 0x127   : > { %v2780_v26 = vcombine.high %v1910_v8, %v1914_v12  ;;  %v2779_v56 = vcombine.low %v1910_v8, %v1914_v12 }
 0x129   : > { %2274 = vmatpush1.bf16.msra.mxu0 %v2773_v40  ;;  %2315 = vmatpush1.bf16.msra.mxu1 %v2775_v41  ;;  %v1921_v40 = vld [vmem:[#allocation5 + $0x130] sm:$0xff]  ;;  %v1918_v41 = vld [vmem:[#allocation5 + $0x118] sm:$0xff] }
 0x12a   : > { %2275 = vmatprep.subr.bf16.mxu0 %v2782_v42  ;;  %2316 = vmatprep.subr.bf16.mxu1 %v2784_v47  ;;  %v1922_v42 = vld [vmem:[#allocation5 + $0x138] sm:$0xff]  ;;  %v2777_v47 = vcombine.low %v1909_v62, %v1913_v6  ;;  %v2786_v48 = vcombine.high %v1917_v31, %v1921_v40 }
 0x12d   : > { %2276 = vmatpush1.bf16.msra.mxu0 %v2781_v55  ;;  %2317 = vmatpush1.bf16.msra.mxu1 %v2783_v1  ;;  %v1926_v55 = vld [vmem:[#allocation5 + $0x158] sm:$0xff] }
 0x12e   : > { %2277 = vmatprep.subr.bf16.mxu0 %v2790_v2  ;;  %2318 = vmatprep.subr.bf16.mxu1 %v2792_v3  ;;  %v1930_v1 = vld [vmem:[#allocation5 + $0x178] sm:$0xff]  ;;  %v2785_v2 = vcombine.low %v1917_v31, %v1921_v40  ;;  %v2787_v3 = vcombine.low %v1918_v41, %v1922_v42 }
 0x12f   : > { %v2796_v32 = vcombine.high %v1926_v55, %v1930_v1 }
 0x131   : > { %2278 = vmatpush1.bf16.msra.mxu0 %v2789_v39  ;;  %2319 = vmatpush1.bf16.msra.mxu1 %v2791_v0  ;;  %v1934_v39 = vld [vmem:[#allocation5 + $0x198] sm:$0xff] }
 0x132   : > { %2279 = vmatprep.subr.bf16.mxu0 %v2798_v58  ;;  %2320 = vmatprep.subr.bf16.mxu1 %v2800_v63  ;;  %v1938_v0 = vld [vmem:[#allocation5 + $0x1b8] sm:$0xff]  ;;  %v2793_v58 = vcombine.low %v1925_v49, %v1929_v50  ;;  %v2795_v63 = vcombine.low %v1926_v55, %v1930_v1 }
 0x133   : > { %v2804_v18 = vcombine.high %v1934_v39, %v1938_v0 }
 0x135   : > { %2280 = vmatpush1.bf16.msra.mxu0 %v2797_v17  ;;  %2321 = vmatpush1.bf16.msra.mxu1 %v2799_v4  ;;  %v1945_v17 = vld [vmem:[#allocation5 + $0x1f0] sm:$0xff] }
 0x136   : > { %2281 = vmatprep.subr.bf16.mxu0 %v2806_v5  ;;  %2322 = vmatprep.subr.bf16.mxu1 %v2808_v9  ;;  %v1942_v9 = vld [vmem:[#allocation5 + $0x1d8] sm:$0xff] }
 0x137   : > { %v2812_v36 = vcombine.high %v1942_v9, %v1946_v10 }
 0x139   : > { %2282 = vmatpush1.bf16.msra.mxu0 %v2805_v20  ;;  %2323 = vmatpush1.bf16.msra.mxu1 %v2807_v22  ;;  %v2801_v20 = vcombine.low %v1933_v33, %v1937_v34 }
 0x13a   : > { %2349 = vmatprep.subr.bf16.mxu0 %v2754_v27  ;;  %2390 = vmatprep.subr.bf16.mxu1 %v2756_v28  ;;  %v2803_v27 = vcombine.low %v1934_v39, %v1938_v0  ;;  %v2810_v28 = vcombine.high %v1941_v23, %v1945_v17 }
 0x13c   : > { %2300 = vmatmul.mubr.bf16.vlgmr.msra.gmra.mrb[24].mxu0 %v3529_v35  ;;  %2341 = vmatmul.mubr.bf16.vlgmr.msra.gmra.mrb[24].mxu1 %v3529_v35 }
 0x13d   : > { %2350 = vmatpush1.bf16.msra.mxu0 %v2753_v38  ;;  %2391 = vmatpush1.bf16.msra.mxu1 %v2755_v43  ;;  %v2809_v38 = vcombine.low %v1941_v23, %v1945_v17  ;;  %v2811_v43 = vcombine.low %v1942_v9, %v1946_v10 }
 0x13e   : > { %2351 = vmatprep.subr.bf16.mxu0 %v2762_v44  ;;  %2392 = vmatprep.subr.bf16.mxu1 %v2764_v45 }
 0x13f   : > { %2381 = vmatprep.mubr.bf16.mxu0 %v3637_v57  ;;  %2422 = vmatprep.mubr.bf16.mxu1 %v3637_v57  ;;  %v2788_v57 = vcombine.high %v1918_v41, %v1922_v42 }
 0x141   : > { %2352 = vmatpush1.bf16.msra.mxu0 %v2761_v54  ;;  %2393 = vmatpush1.bf16.msra.mxu1 %v2763_v59 }
 0x142   : > { %2353 = vmatprep.subr.bf16.mxu0 %v2770_v60  ;;  %2394 = vmatprep.subr.bf16.mxu1 %v2772_v61 }
 0x145   : > { %2354 = vmatpush1.bf16.msra.mxu0 %v2769_v13  ;;  %2395 = vmatpush1.bf16.msra.mxu1 %v2771_v24 }
 0x146   : > { %2355 = vmatprep.subr.bf16.mxu0 %v2778_v25  ;;  %2396 = vmatprep.subr.bf16.mxu1 %v2780_v26 }
 0x149   : > { %2356 = vmatpush1.bf16.msra.mxu0 %v2777_v47  ;;  %2397 = vmatpush1.bf16.msra.mxu1 %v2779_v56 }
 0x14a   : > { %2357 = vmatprep.subr.bf16.mxu0 %v2786_v48  ;;  %2398 = vmatprep.subr.bf16.mxu1 %v2788_v57 }
 0x14d   : > { %2358 = vmatpush1.bf16.msra.mxu0 %v2785_v2  ;;  %2399 = vmatpush1.bf16.msra.mxu1 %v2787_v3 }
 0x14e   : > { %2359 = vmatprep.subr.bf16.mxu0 %v2794_v7  ;;  %2400 = vmatprep.subr.bf16.mxu1 %v2796_v32 }
 0x14f   : > { %v623_v16 = vpop.f32.mrb[0].mxu0  ;;  %v664_v5 = vpop.f32.mrb[0].mxu1 }
 0x150   : > { %v625_v4 = vpop.f32.mrb[1].mxu0  ;;  %v666_v19 = vpop.f32.mrb[1].mxu1 }
 0x151   : > { %v753_v11 = vmax.f32 %v623_v16, %v625_v4  ;;  %v627_v15 = vpop.f32.mrb[2].mxu0  ;;  %2360 = vmatpush1.bf16.msra.mxu0 %v2793_v58  ;;  %2401 = vmatpush1.bf16.msra.mxu1 %v2795_v63  ;;  %v668_v22 = vpop.f32.mrb[2].mxu1 }
 0x152   : > { %v628_v21 = vpop.f32.mrb[3].mxu0  ;;  %2361 = vmatprep.subr.bf16.mxu0 %v2802_v14  ;;  %v669_v30 = vpop.f32.mrb[3].mxu1  ;;  %2402 = vmatprep.subr.bf16.mxu1 %v2804_v18 }
 0x153   : > { %v754_v29 = vmax.f32 %v753_v11, %v664_v5 }
 0x155   : > { %v755_v37 = vmax.f32 %v754_v29, %v666_v19  ;;  %2362 = vmatpush1.bf16.msra.mxu0 %v2801_v20  ;;  %2403 = vmatpush1.bf16.msra.mxu1 %v2803_v27 }
 0x156   : > { %2363 = vmatprep.subr.bf16.mxu0 %v2810_v28  ;;  %2404 = vmatprep.subr.bf16.mxu1 %v2812_v36 }
 0x159   : > { %2364 = vmatpush1.bf16.msra.mxu0 %v2809_v38  ;;  %2405 = vmatpush1.bf16.msra.mxu1 %v2811_v43 }
 0x15c   : > { %2382 = vmatmul.mubr.bf16.vlgmr.msra.gmra.mrb[28].mxu0 %v3529_v35  ;;  %2423 = vmatmul.mubr.bf16.vlgmr.msra.gmra.mrb[28].mxu1 %v3529_v35 }
 0x16f   : > { %v705_v44 = vpop.f32.mrb[4].mxu0  ;;  %v746_v51 = vpop.f32.mrb[4].mxu1 }
 0x170   : > { %v756_v45 = vmax.f32 %v755_v37, %v705_v44  ;;  %v707_v46 = vpop.f32.mrb[5].mxu0  ;;  %v748_v53 = vpop.f32.mrb[5].mxu1 }
 0x171   : > { %v709_v52 = vpop.f32.mrb[6].mxu0  ;;  %v750_v60 = vpop.f32.mrb[6].mxu1 }
 0x172   : > { %v757_v54 = vmax.f32 %v756_v45, %v707_v46  ;;  %v710_v59 = vpop.f32.mrb[7].mxu0  ;;  %v751_v61 = vpop.f32.mrb[7].mxu1 }
 0x174   : > { %v758_v62 = vmax.f32 %v757_v54, %v746_v51 }
 0x176   : > { %v759_v6 = vmax.f32 %v758_v62, %v748_v53 }
 0x18f   : > { %v1181_v8 = vpop.f32.mrb[8].mxu0  ;;  %v1222_v13 = vpop.f32.mrb[8].mxu1 }
 0x190   : > { %v1183_v12 = vpop.f32.mrb[9].mxu0  ;;  %v1224_v26 = vpop.f32.mrb[9].mxu1 }
 0x191   : > { %v1311_v24 = vmax.f32 %v1181_v8, %v1183_v12  ;;  %v1185_v25 = vpop.f32.mrb[10].mxu0  ;;  %v1226_v35 = vpop.f32.mrb[10].mxu1 }
 0x192   : > { %v1186_v31 = vpop.f32.mrb[11].mxu0  ;;  %v1227_v41 = vpop.f32.mrb[11].mxu1  ;;  %v2813_v35 = vld [vmem:[%s3591_s2] ss:$0 sm:$0xff] }
 0x193   : > { %v1312_v40 = vmax.f32 %v1311_v24, %v1222_v13 }
 0x195   : > { %v1313_v42 = vmax.f32 %v1312_v40, %v1224_v26 }
 0x1af   : > { %v1263_v47 = vpop.f32.mrb[12].mxu0  ;;  %v1304_v57 = vpop.f32.mrb[12].mxu1 }
 0x1b0   : > { %v1314_v56 = vmax.f32 %v1313_v42, %v1263_v47  ;;  %v1265_v48 = vpop.f32.mrb[13].mxu0  ;;  %v1306_v50 = vpop.f32.mrb[13].mxu1 }
 0x1b1   : > { %v1267_v49 = vpop.f32.mrb[14].mxu0  ;;  %v1308_v2 = vpop.f32.mrb[14].mxu1 }
 0x1b2   : > { %v1315_v55 = vmax.f32 %v1314_v56, %v1265_v48  ;;  %v1268_v1 = vpop.f32.mrb[15].mxu0  ;;  %v1309_v3 = vpop.f32.mrb[15].mxu1 }
 0x1b4   : > { %v1316_v7 = vmax.f32 %v1315_v55, %v1304_v57 }
 0x1b6   : > { %v1317_v32 = vmax.f32 %v1316_v7, %v1306_v50 }
 0x1b8   : > { %v1319_v33 = vmax.f32 %v759_v6, %v1317_v32 }
 0x1cf   : > { %v1741_v34 = vpop.f32.mrb[16].mxu0  ;;  %v1782_v0 = vpop.f32.mrb[16].mxu1 }
 0x1d0   : > { %v1743_v39 = vpop.f32.mrb[17].mxu0  ;;  %v1784_v14 = vpop.f32.mrb[17].mxu1 }
 0x1d1   : > { %v1871_v58 = vmax.f32 %v1741_v34, %v1743_v39  ;;  %v1745_v63 = vpop.f32.mrb[18].mxu0  ;;  %v1786_v18 = vpop.f32.mrb[18].mxu1 }
 0x1d2   : > { %v1746_v16 = vpop.f32.mrb[19].mxu0  ;;  %v1787_v17 = vpop.f32.mrb[19].mxu1 }
 0x1d3   : > { %v1872_v23 = vmax.f32 %v1871_v58, %v1782_v0 }
 0x1d5   : > { %v1873_v4 = vmax.f32 %v1872_v23, %v1784_v14 }
 0x1ef   : > { %v1823_v5 = vpop.f32.mrb[20].mxu0  ;;  %v1864_v11 = vpop.f32.mrb[20].mxu1 }
 0x1f0   : > { %v1874_v9 = vmax.f32 %v1873_v4, %v1823_v5  ;;  %v1825_v10 = vpop.f32.mrb[21].mxu0  ;;  %v1866_v19 = vpop.f32.mrb[21].mxu1 }
 0x1f1   : > { %v1827_v15 = vpop.f32.mrb[22].mxu0  ;;  %v1868_v22 = vpop.f32.mrb[22].mxu1 }
 0x1f2   : > { %v1875_v20 = vmax.f32 %v1874_v9, %v1825_v10  ;;  %v1828_v21 = vpop.f32.mrb[23].mxu0  ;;  %v1869_v27 = vpop.f32.mrb[23].mxu1 }
 0x1f4   : > { %v1876_v28 = vmax.f32 %v1875_v20, %v1864_v11 }
 0x1f6   : > { %v1877_v29 = vmax.f32 %v1876_v28, %v1866_v19 }
 0x1f8   : > { %v1879_v30 = vmax.f32 %v1319_v33, %v1877_v29 }
 0x20f   : > { %v2301_v36 = vpop.f32.mrb[24].mxu0  ;;  %v2342_v38 = vpop.f32.mrb[24].mxu1 }
 0x210   : > { %v2303_v37 = vpop.f32.mrb[25].mxu0  ;;  %v2344_v45 = vpop.f32.mrb[25].mxu1 }
 0x211   : > { %v2431_v43 = vmax.f32 %v2301_v36, %v2303_v37  ;;  %v2305_v44 = vpop.f32.mrb[26].mxu0  ;;  %v2346_v51 = vpop.f32.mrb[26].mxu1 }
 0x212   : > { %v2306_v46 = vpop.f32.mrb[27].mxu0  ;;  %v2347_v53 = vpop.f32.mrb[27].mxu1 }
 0x213   : > { %v2432_v52 = vmax.f32 %v2431_v43, %v2342_v38 }
 0x215   : > { %v2433_v54 = vmax.f32 %v2432_v52, %v2344_v45 }
 0x22f   : > { %v2383_v59 = vpop.f32.mrb[28].mxu0  ;;  %v2424_v62 = vpop.f32.mrb[28].mxu1 }
 0x230   : > { %v2434_v60 = vmax.f32 %v2433_v54, %v2383_v59  ;;  %v2385_v61 = vpop.f32.mrb[29].mxu0  ;;  %v2426_v8 = vpop.f32.mrb[29].mxu1 }
 0x231   : > { %v2387_v6 = vpop.f32.mrb[30].mxu0  ;;  %v2428_v24 = vpop.f32.mrb[30].mxu1 }
 0x232   : > { %v2435_v12 = vmax.f32 %v2434_v60, %v2385_v61  ;;  %v2388_v13 = vpop.f32.mrb[31].mxu0  ;;  %v2429_v25 = vpop.f32.mrb[31].mxu1 }
 0x234   : > { %v2436_v26 = vmax.f32 %v2435_v12, %v2424_v62 }
 0x236   : > { %v2437_v31 = vmax.f32 %v2436_v26, %v2426_v8 }
 0x238   : > { %v2439_v40 = vmax.f32 %v1879_v30, %v2437_v31 }
 0x23a   : > { %v2449_v41 = vadd.f32 %v2813_v35, %v2439_v40 }
 0x23c   : > { %v2450_v42 = vmax.f32 %v2449_v41, 0.0 }
 0x23e   : > { %2451 = vst [vmem:[%s201_s26] sm:$0xff] %v2450_v42 }
 0x23f   : > { %2950 = shalt.err (!%p2947_p7)
}
 0x240   : > { %s2951_s23 = scalar_lea.hbm %s3545_s10, 128  ;;  %s2955_s6 = scalar_lea.hbm %s3592_s3, 256 }
 0x241   : > { %p2952_p9 = scmp.ne.s32.totalorder %s3545_s10, %s2951_s23  ;;  %p2956_p0 = scmp.lt.u32.totalorder %s3545_s10, %s3592_s3 }
 0x242   : > { %p2957_p11 = scmp.lt.u32.totalorder %s2955_s6, %s2951_s23  ;;  %p2959_p4 = scmp.lt.u32.totalorder %s2951_s23, %s3545_s10 }
 0x243   : > { %p2953_p2 = pnand %p2952_p9, %p3126_p12 }
 0x244   : > { %p2958_p1 = por %p2957_p11, %p2956_p0 }
 0x245   : > { %p2954_p5 = pneg %p2953_p2 }
 0x246   : > { %p2960_p6 = por %p2959_p4, %p2958_p1 }
 0x248   : > { %p2961_p8 = pnand %p2960_p6, %p2954_p5 }
 0x24a   : > { %2964 = shalt.err (!%p2961_p8)
}
 0x24b   : > { %2825 = dma.vmem_to_hbm [thread:$0]  (%p3126_p12), %s3547_s5, 128, %s3545_s10, %s2453_s11  }
 0x24c PF: > { %s2478_s20 = sand.u32 1, %s2995_s12   ;;  %p3648_p10 = scmp.ne.s32.totalorder %s3617_s19, 0 }
 0x24d   : > { %p3649_p13 = scmp.ge.s32.totalorder %s3007_s15, 2  ;;  %s2479_s4 = scalar_lea.sflag [#allocation4], %s2478_s20 }
 0x24f   : > { %p2836_p3 = pnand %p3649_p13, %p3648_p10 }
 0x251   : > { %2990 = dma.done.wait (!%p2836_p3), %s2479_s4, 128  }
 0x252   : > { %2992 = vsyncadd (!%p2836_p3), %s2479_s4, 4294967168  ;;  %p17_p7 = scmp.ge.s32.totalorder %s3091_s24, 4   ;;  %s3650_s12 = smov %s2999_s13 }
 0x253   : > { %s3651_s13 = smov %s3003_s14  ;;  %s3652_s14 = smov %s3122_s17 }
 0x254   : > { %s3653_s15 = smov %s3091_s24  ;;  %19 = sbr.rel (!%p17_p7) target bundleno = 6 (0x6), region = 81 }
 0x25b   :  { %2484 = vsyncpa [#allocation3], 1 }
 0x25c   :  { %2486 = vsyncpa [#allocation3 + $0x1], 1 }
 0x25d   :  { %2487 = vsyncpa [#allocation6], 1 }
 0x25e   :  { %2488 = vsyncpa [#allocation4], 1 }
 0x25f   :  { %2490 = vsyncpa [#allocation4 + $0x1], 1 }

</bundles_post_ra>
